<compile_context>
chip_gen: v5e
topology: v5e:2x2
jax: 0.10.0
libtpu: 0.0.40
codegen_flags: <defaults>
</compile_context>

<pallas_src>
import functools

import jax
import jax.numpy as jnp
from jax.experimental import pallas as pl
from jax.experimental.pallas import tpu as pltpu

DEPTH = 3
BN_EPS = 1e-5
LANE = 128
SUBLANE = 8
INT8_ROW_GRANULE = 32      # second-minor tiling granule for int8 row panels


def _round_up(v, m):
    return (v + m - 1) // m * m


def _vmem_capacity_bytes():
    try:
        return int(pltpu.get_tpu_info().vmem_capacity_bytes)
    except Exception:
        return 64 << 20    # conservative fallback (v7x per-core VMEM)


def _adj_to_bf16(a_i8):
    # int8 {0,1} adjacency -> exact bf16 MXU operand; route through f32
    # (the universally supported convert chain on all TPU generations).
    return a_i8.astype(jnp.float32).astype(jnp.bfloat16)


def _make_row_mask(n_true, n_pad):
    if n_pad == n_true:
        return None
    rows = jax.lax.broadcasted_iota(jnp.int32, (n_pad, 1), 0)
    return (rows < n_true).astype(jnp.float32)


def _bn_relu(h, gamma, beta, row_mask, inv_n):
    """Training-mode BatchNorm over the true node rows, folded into a single
    scale/shift, followed by ReLU.  Both column reductions (sum h, sum h*h)
    are fused into one cross-sublane sweep over a lane-concatenated block;
    the one-pass variance is clamped at 0 against rounding."""
    c = h.shape[-1]
    hm = h if row_mask is None else h * row_mask
    s = jnp.sum(jnp.concatenate([hm, hm * h], axis=-1), axis=0, keepdims=True)
    mu = s[:, :c] * inv_n
    var = jnp.maximum(s[:, c:] * inv_n - mu * mu, 0.0)
    scale = gamma * jax.lax.rsqrt(var + BN_EPS)
    shift = beta - mu * scale
    return jnp.maximum(h * scale + shift, 0.0)


# ----------------------------------------------------------------------------
# Path 1: monolithic, everything VMEM-resident (small / medium graphs)
# ----------------------------------------------------------------------------
def roadgin_kernel(x_ref, a_ref, eps_ref,
                   w1_ref, b1_ref, g1_ref, be1_ref,
                   w2_ref, b2_ref, go_ref, bo_ref,
                   out_ref, *, n_true, n_pad):
    x = x_ref[...]                          # (Np, Dp) f32
    a = _adj_to_bf16(a_ref[...])            # int8 -> bf16 once (0/1 exact)
    inv_n = jnp.float32(1.0 / n_true)
    row_mask = _make_row_mask(n_true, n_pad)

    max_acc = None
    for i in range(DEPTH):                  # static, unrolled over GIN layers
        # GIN sum-aggregation on the MXU; self-term folded straight into the
        # first Linear's operand (keeps the live temporary set small).
        agg = jnp.dot(a, x.astype(jnp.bfloat16),
                      preferred_element_type=jnp.float32)
        h1 = _bn_relu(
            jnp.dot(((1.0 + eps_ref[i]) * x + agg).astype(jnp.bfloat16),
                    w1_ref[i], preferred_element_type=jnp.float32) + b1_ref[i],
            g1_ref[i], be1_ref[i], row_mask, inv_n)
        x = _bn_relu(
            jnp.dot(h1.astype(jnp.bfloat16), w2_ref[i],
                    preferred_element_type=jnp.float32) + b2_ref[i],
            go_ref[i], bo_ref[i], row_mask, inv_n)
        max_acc = x if max_acc is None else jnp.maximum(max_acc, x)

    out_ref[...] = max_acc.astype(out_ref.dtype)   # lane-dense unmasked store


# ----------------------------------------------------------------------------
# Path 2: row-tiled streaming path (adjacency streamed in row panels;
# activations stay VMEM-resident in scratch).  grid = (layer, row_tile).
# ----------------------------------------------------------------------------
def roadgin_tiled_kernel(oe_ref, x0_ref, a_ref,
                         w1_ref, b1_ref, g1_ref, be1_ref,
                         w2_ref, b2_ref, go_ref, bo_ref,
                         out_ref,
                         x_f32, x_bf, h1_buf, max_acc,
                         *, n_true, n_pad, row_tile):
    l = pl.program_id(0)
    i = pl.program_id(1)
    n_tiles = pl.num_programs(1)
    inv_n = jnp.float32(1.0 / n_true)

    @pl.when(jnp.logical_and(l == 0, i == 0))
    def _init():
        x0 = x0_ref[...]
        x_f32[...] = x0
        x_bf[...] = x0.astype(jnp.bfloat16)
        max_acc[...] = jnp.zeros_like(max_acc)      # post-ReLU outputs are >= 0

    # ---- per row panel: streamed A @ X aggregation + first Linear ----------
    rows = pl.ds(pl.multiple_of(i * row_tile, row_tile), row_tile)
    agg = jnp.dot(_adj_to_bf16(a_ref[...]), x_bf[...],
                  preferred_element_type=jnp.float32)
    h = oe_ref[0, 0] * x_f32[rows, :] + agg         # (1 + eps_l) * x + agg
    h1_buf[rows, :] = jnp.dot(h.astype(jnp.bfloat16), w1_ref[...],
                              preferred_element_type=jnp.float32) + b1_ref[...]

    # ---- end of layer: BN needs full-column stats over all node rows -------
    @pl.when(i == n_tiles - 1)
    def _finish_layer():
        row_mask = _make_row_mask(n_true, n_pad)
        h1 = _bn_relu(h1_buf[...], g1_ref[...], be1_ref[...], row_mask, inv_n)
        xn = _bn_relu(
            jnp.dot(h1.astype(jnp.bfloat16), w2_ref[...],
                    preferred_element_type=jnp.float32) + b2_ref[...],
            go_ref[...], bo_ref[...], row_mask, inv_n)
        max_acc[...] = jnp.maximum(max_acc[...], xn)
        x_f32[...] = xn                              # carry to next layer
        x_bf[...] = xn.astype(jnp.bfloat16)

        @pl.when(l == DEPTH - 1)
        def _store():
            out_ref[...] = max_acc[...].astype(out_ref.dtype)


# ----------------------------------------------------------------------------
# Wrapper with VMEM-capacity-based dispatch
# ----------------------------------------------------------------------------
def roadgin_forward(x, adj, params, *, force_tiled=False, row_tile=None):
    n, d = x.shape
    h_dim = params["w1"].shape[-1]
    d_pad = _round_up(d, LANE)
    h_pad = _round_up(h_dim, LANE)
    bf = jnp.bfloat16
    cap = _vmem_capacity_bytes()

    pad2 = lambda a, r, c: jnp.pad(a, ((0, r - a.shape[0]), (0, c - a.shape[1])))
    pad_last = lambda a, c: jnp.pad(a, ((0, 0), (0, 0), (0, c - a.shape[2])))
    pad_w = lambda a, r, c: jnp.pad(a, ((0, 0), (0, r - a.shape[1]),
                                        (0, c - a.shape[2])))

    w1_p = pad_w(params["w1"], d_pad, h_pad).astype(bf)
    w2_p = pad_w(params["w2"], h_pad, d_pad).astype(bf)
    b1_p = pad_last(params["b1"], h_pad).astype(jnp.float32)
    g1_p = pad_last(params["g1"], h_pad).astype(jnp.float32)
    be1_p = pad_last(params["be1"], h_pad).astype(jnp.float32)
    b2_p = pad_last(params["b2"], d_pad).astype(jnp.float32)
    go_p = pad_last(params["go"], d_pad).astype(jnp.float32)
    bo_p = pad_last(params["bo"], d_pad).astype(jnp.float32)
    eps = params["eps"].reshape(DEPTH).astype(jnp.float32)

    # monolithic all-resident footprint estimate (A int8 buf + f32 cast temp +
    # bf16 copy, live f32 activations, bf16 weights, x in / out)
    n8 = _round_up(n, SUBLANE)
    mono_est = (7 * n8 * n8
                + 6 * n8 * max(d_pad, h_pad) * 4
                + 2 * DEPTH * d_pad * h_pad * 2
                + 2 * n8 * d_pad * 4
                + (2 << 20))
    use_tiled = force_tiled or mono_est > int(0.75 * cap)

    if not use_tiled:
        # ------------------------ monolithic path ---------------------------
        n_pad = n8
        x_p = pad2(x, n_pad, d_pad).astype(jnp.float32)
        adj_p = pad2(adj, n_pad, n_pad).astype(jnp.int8)   # 0/1 unweighted

        vmem = pl.BlockSpec(memory_space=pltpu.MemorySpace.VMEM)
        smem = pl.BlockSpec(memory_space=pltpu.MemorySpace.SMEM)

        flops = int(DEPTH * (2 * n_pad * n_pad * d_pad + 4 * n_pad * d_pad * h_pad))
        bytes_accessed = int(adj_p.size + x_p.size * 4
                             + (w1_p.size + w2_p.size) * 2
                             + n_pad * d_pad * 4)
        vmem_limit = min(int(0.9 * cap), max(int(1.25 * mono_est), 32 << 20))

        out_p = pl.pallas_call(
            functools.partial(roadgin_kernel, n_true=n, n_pad=n_pad),
            out_shape=jax.ShapeDtypeStruct((n_pad, d_pad), jnp.float32),
            in_specs=[vmem, vmem, smem] + [vmem] * 8,
            out_specs=vmem,
            compiler_params=pltpu.CompilerParams(vmem_limit_bytes=vmem_limit),
            cost_estimate=pl.CostEstimate(
                flops=flops,
                transcendentals=int(DEPTH * (h_pad + d_pad)),
                bytes_accessed=bytes_accessed),
        )(x_p, adj_p, eps, w1_p, b1_p, g1_p, be1_p, w2_p, b2_p, go_p, bo_p)
    else:
        # ------------------------ row-tiled streaming path -------------------
        mt = row_tile if row_tile is not None else 256   # 256 fills v6e/v7x MXU
        mt = _round_up(max(mt, SUBLANE), INT8_ROW_GRANULE)
        n_pad = _round_up(n, mt)
        n_tiles = n_pad // mt

        x_p = pad2(x, n_pad, d_pad).astype(jnp.float32)
        adj_p = pad2(adj, n_pad, n_pad).astype(jnp.int8)
        one_eps = (1.0 + eps).reshape(DEPTH, 1, 1).astype(jnp.float32)

        in_specs = [
            pl.BlockSpec((None, 1, 1), lambda l, i: (l, 0, 0)),          # 1+eps_l
            pl.BlockSpec((n_pad, d_pad), lambda l, i: (0, 0)),           # x0 resident
            pl.BlockSpec((mt, n_pad), lambda l, i: (i, 0)),              # A row panels
            pl.BlockSpec((None, d_pad, h_pad), lambda l, i: (l, 0, 0)),  # w1
            pl.BlockSpec((None, 1, h_pad), lambda l, i: (l, 0, 0)),      # b1
            pl.BlockSpec((None, 1, h_pad), lambda l, i: (l, 0, 0)),      # g1
            pl.BlockSpec((None, 1, h_pad), lambda l, i: (l, 0, 0)),      # be1
            pl.BlockSpec((None, h_pad, d_pad), lambda l, i: (l, 0, 0)),  # w2
            pl.BlockSpec((None, 1, d_pad), lambda l, i: (l, 0, 0)),      # b2
            pl.BlockSpec((None, 1, d_pad), lambda l, i: (l, 0, 0)),      # go
            pl.BlockSpec((None, 1, d_pad), lambda l, i: (l, 0, 0)),      # bo
        ]
        out_spec = pl.BlockSpec((n_pad, d_pad), lambda l, i: (0, 0))
        scratch = [pltpu.VMEM((n_pad, d_pad), jnp.float32),    # x_f32 (layer input)
                   pltpu.VMEM((n_pad, d_pad), jnp.bfloat16),   # x_bf  (MXU operand)
                   pltpu.VMEM((n_pad, h_pad), jnp.float32),    # h1 buffer
                   pltpu.VMEM((n_pad, d_pad), jnp.float32)]    # running max

        tiled_est = (2 * mt * n_pad * (1 + 4 + 2)              # A panels + cast temps
                     + n_pad * d_pad * (4 + 2 + 4 + 4 + 4)
                     + n_pad * h_pad * 4 * 3
                     + 4 * d_pad * h_pad * 2 * 2
                     + (4 << 20))
        vmem_limit = min(int(0.9 * cap), max(int(1.25 * tiled_est), 32 << 20))

        flops = int(DEPTH * (2 * n_pad * n_pad * d_pad + 4 * n_pad * d_pad * h_pad))
        bytes_accessed = int(DEPTH * adj_p.size                 # A streamed per layer
                             + x_p.size * 4
                             + (w1_p.size + w2_p.size) * 2
                             + n_pad * d_pad * 4)

        out_p = pl.pallas_call(
            functools.partial(roadgin_tiled_kernel,
                              n_true=n, n_pad=n_pad, row_tile=mt),
            out_shape=jax.ShapeDtypeStruct((n_pad, d_pad), jnp.float32),
            grid_spec=pltpu.PrefetchScalarGridSpec(
                num_scalar_prefetch=0,
                grid=(DEPTH, n_tiles),
                in_specs=in_specs,
                out_specs=out_spec,
                scratch_shapes=scratch),
            compiler_params=pltpu.CompilerParams(
                dimension_semantics=("arbitrary", "arbitrary"),
                vmem_limit_bytes=vmem_limit),
            cost_estimate=pl.CostEstimate(
                flops=flops,
                transcendentals=int(DEPTH * (h_pad + d_pad)),
                bytes_accessed=bytes_accessed),
        )(one_eps, x_p, adj_p, w1_p, b1_p, g1_p, be1_p, w2_p, b2_p, go_p, bo_p)

    out = out_p[:n, :d]
    # Trailing zero row appended outside the kernel (keeps the kernel's output
    # store lane-dense and unmasked).
    return jnp.concatenate([out, jnp.zeros((1, d), out.dtype)], axis=0)


# ----------------------------------------------------------------------------
# Pure-JAX reference (PyTorch-module semantics)
# ----------------------------------------------------------------------------
def roadgin_ref(x, adj, params, mxu_dtype=jnp.float32):
    def dot(a, b):
        return jnp.dot(a.astype(mxu_dtype), b.astype(mxu_dtype),
                       preferred_element_type=jnp.float32)

    def bn(h, g, b):
        mu = h.mean(0, keepdims=True)
        var = ((h - mu) ** 2).mean(0, keepdims=True)
        return (h - mu) / jnp.sqrt(var + BN_EPS) * g + b

    outs = []
    for i in range(DEPTH):
        agg = dot(adj, x)
        h = (1.0 + params["eps"][i]) * x + agg
        h1 = jnp.maximum(bn(dot(h, params["w1"][i]) + params["b1"][i],
                            params["g1"][i], params["be1"][i]), 0.0)
        h2 = dot(h1, params["w2"][i]) + params["b2"][i]
        x = jnp.maximum(bn(h2, params["go"][i], params["bo"][i]), 0.0)
        outs.append(x)
    m = jnp.max(jnp.stack(outs, 0), axis=0)
    return jnp.concatenate([m, jnp.zeros((1, x.shape[1]), x.dtype)], axis=0)


def make_params(key, emb_dim):
    d, h = emb_dim, 2 * emb_dim
    ks = jax.random.split(key, 9)
    return {
        "eps": 0.1 * jax.random.normal(ks[0], (DEPTH,), jnp.float32),
        "w1": 0.1 * jax.random.normal(ks[1], (DEPTH, d, h), jnp.float32),
        "b1": 0.05 * jax.random.normal(ks[2], (DEPTH, 1, h), jnp.float32),
        "g1": 1.0 + 0.05 * jax.random.normal(ks[3], (DEPTH, 1, h), jnp.float32),
        "be1": 0.05 * jax.random.normal(ks[4], (DEPTH, 1, h), jnp.float32),
        "w2": 0.1 * jax.random.normal(ks[5], (DEPTH, h, d), jnp.float32),
        "b2": 0.05 * jax.random.normal(ks[6], (DEPTH, 1, d), jnp.float32),
        "go": 1.0 + 0.05 * jax.random.normal(ks[7], (DEPTH, 1, d), jnp.float32),
        "bo": 0.05 * jax.random.normal(ks[8], (DEPTH, 1, d), jnp.float32),
    }


def _check(out, x, adj, params, tol_mixed):
    ref_mixed = roadgin_ref(x, adj, params, mxu_dtype=jnp.bfloat16)
    ref_f32 = roadgin_ref(x, adj, params, mxu_dtype=jnp.float32)
    max_err = float(jnp.max(jnp.abs(out - ref_mixed)))
    assert max_err < tol_mixed, f"mixed-precision reference mismatch: {max_err}"
    rel = float(jnp.linalg.norm(out - ref_f32) / jnp.linalg.norm(ref_f32))
    assert rel < 0.05, f"f32 reference relative error too large: {rel}"


if __name__ == "__main__":
    EMB_DIM = 32
    key = jax.random.PRNGKey(0)
    k1, k2, k3, k4, k5 = jax.random.split(key, 5)
    params = make_params(k5, EMB_DIM)

    # --- test 1: auto dispatch (monolithic all-resident at this size) -------
    N1 = 30                                     # not a multiple of 8 -> masked BN
    x1 = jax.random.normal(k1, (N1, EMB_DIM), jnp.float32)
    adj1 = (jax.random.uniform(k2, (N1, N1)) < 0.2).astype(jnp.float32)
    out1 = jax.block_until_ready(roadgin_forward(x1, adj1, params))
    assert out1.shape == (N1 + 1, EMB_DIM), out1.shape
    _check(out1, x1, adj1, params, tol_mixed=5e-3)

    # --- test 2: forced row-tiled streaming path (3 row panels, grid (3,3)) --
    N2 = 70
    x2 = jax.random.normal(k3, (N2, EMB_DIM), jnp.float32)
    adj2 = (jax.random.uniform(k4, (N2, N2)) < 0.2).astype(jnp.float32)
    out2 = jax.block_until_ready(
        roadgin_forward(x2, adj2, params, force_tiled=True, row_tile=32))
    assert out2.shape == (N2 + 1, EMB_DIM), out2.shape
    _check(out2, x2, adj2, params, tol_mixed=1e-2)

    print("KERNEL_OK")
</pallas_src>

<mosaic_0001>
module attributes {stable_mosaic.version = 11 : i64} {
  func.func @roadgin_kernel(%arg0: memref<32x128xf32, #tpu.memory_space<vmem>>, %arg1: memref<32x32xi8, #tpu.memory_space<vmem>>, %arg2: memref<3xf32, #tpu.memory_space<smem>>, %arg3: memref<3x128x128xbf16, #tpu.memory_space<vmem>>, %arg4: memref<3x1x128xf32, #tpu.memory_space<vmem>>, %arg5: memref<3x1x128xf32, #tpu.memory_space<vmem>>, %arg6: memref<3x1x128xf32, #tpu.memory_space<vmem>>, %arg7: memref<3x128x128xbf16, #tpu.memory_space<vmem>>, %arg8: memref<3x1x128xf32, #tpu.memory_space<vmem>>, %arg9: memref<3x1x128xf32, #tpu.memory_space<vmem>>, %arg10: memref<3x1x128xf32, #tpu.memory_space<vmem>>, %arg11: memref<32x128xf32, #tpu.memory_space<vmem>>) attributes {dimension_semantics = [], scalar_prefetch = 0 : i64, scratch_operands = 0 : i64, tpu.core_type = #tpu.core_type<tc>} {
    %c0 = arith.constant 0 : index
    %c0_0 = arith.constant 0 : index
    %0 = vector.load %arg0[%c0, %c0_0] : memref<32x128xf32, #tpu.memory_space<vmem>>, vector<32x128xf32>
    %c0_1 = arith.constant 0 : index
    %c0_2 = arith.constant 0 : index
    %1 = vector.load %arg1[%c0_1, %c0_2] : memref<32x32xi8, #tpu.memory_space<vmem>>, vector<32x32xi8>
    %2 = arith.sitofp %1 : vector<32x32xi8> to vector<32x32xf32>
    %3 = arith.truncf %2 : vector<32x32xf32> to vector<32x32xbf16>
    %4 = tpu.iota {dimensions = array<i32: 0>} : vector<32x1xi32>
    %c30_i32 = arith.constant 30 : i32
    %5 = vector.broadcast %c30_i32 : i32 to vector<32x1xi32>
    %6 = arith.cmpi slt, %4, %5 : vector<32x1xi32>
    %7 = arith.extui %6 : vector<32x1xi1> to vector<32x1xi32>
    %8 = arith.sitofp %7 : vector<32x1xi32> to vector<32x1xf32>
    %9 = arith.truncf %0 : vector<32x128xf32> to vector<32x128xbf16>
    %cst = arith.constant dense<0.000000e+00> : vector<32x128xf32>
    %10 = tpu.matmul %3, %9, %cst {dimension_numbers = #tpu.dot_dimension_numbers<[1], [0], [0], [1], [0, 0, 1, 1], [], []>} : vector<32x32xbf16>, vector<32x128xbf16>, vector<32x128xf32> -> vector<32x128xf32>
    %c0_3 = arith.constant 0 : index
    %11 = memref.load %arg2[%c0_3] : memref<3xf32, #tpu.memory_space<smem>>
    %cst_4 = arith.constant 1.000000e+00 : f32
    %12 = arith.addf %cst_4, %11 : f32
    %13 = vector.broadcast %12 : f32 to vector<32x128xf32>
    %14 = arith.mulf %13, %0 : vector<32x128xf32>
    %15 = arith.addf %14, %10 : vector<32x128xf32>
    %16 = arith.truncf %15 : vector<32x128xf32> to vector<32x128xbf16>
    %c0_5 = arith.constant 0 : index
    %c0_6 = arith.constant 0 : index
    %c0_7 = arith.constant 0 : index
    %17 = vector.load %arg3[%c0_5, %c0_6, %c0_7] : memref<3x128x128xbf16, #tpu.memory_space<vmem>>, vector<1x128x128xbf16>
    %18 = vector.shape_cast %17 : vector<1x128x128xbf16> to vector<128x128xbf16>
    %cst_8 = arith.constant dense<0.000000e+00> : vector<32x128xf32>
    %19 = tpu.matmul %16, %18, %cst_8 {dimension_numbers = #tpu.dot_dimension_numbers<[1], [0], [0], [1], [0, 0, 1, 1], [], []>} : vector<32x128xbf16>, vector<128x128xbf16>, vector<32x128xf32> -> vector<32x128xf32>
    %c0_9 = arith.constant 0 : index
    %c0_10 = arith.constant 0 : index
    %c0_11 = arith.constant 0 : index
    %20 = vector.load %arg4[%c0_9, %c0_10, %c0_11] : memref<3x1x128xf32, #tpu.memory_space<vmem>>, vector<1x1x128xf32>
    %21 = vector.shape_cast %20 : vector<1x1x128xf32> to vector<1x128xf32>
    %22 = vector.broadcast %21 : vector<1x128xf32> to vector<32x128xf32>
    %23 = arith.addf %19, %22 : vector<32x128xf32>
    %c0_12 = arith.constant 0 : index
    %c0_13 = arith.constant 0 : index
    %c0_14 = arith.constant 0 : index
    %24 = vector.load %arg5[%c0_12, %c0_13, %c0_14] : memref<3x1x128xf32, #tpu.memory_space<vmem>>, vector<1x1x128xf32>
    %25 = vector.shape_cast %24 : vector<1x1x128xf32> to vector<1x128xf32>
    %c0_15 = arith.constant 0 : index
    %c0_16 = arith.constant 0 : index
    %c0_17 = arith.constant 0 : index
    %26 = vector.load %arg6[%c0_15, %c0_16, %c0_17] : memref<3x1x128xf32, #tpu.memory_space<vmem>>, vector<1x1x128xf32>
    %27 = vector.shape_cast %26 : vector<1x1x128xf32> to vector<1x128xf32>
    %28 = vector.broadcast %8 : vector<32x1xf32> to vector<32x128xf32>
    %29 = arith.mulf %23, %28 : vector<32x128xf32>
    %30 = arith.mulf %29, %23 : vector<32x128xf32>
    %31 = tpu.concatenate %29, %30 in 1 : vector<32x128xf32>, vector<32x128xf32> -> vector<32x256xf32>
    %cst_18 = arith.constant dense<0.000000e+00> : vector<256xf32>
    %32 = vector.multi_reduction <add>, %31, %cst_18 [0] : vector<32x256xf32> to vector<256xf32>
    %33 = vector.shape_cast %32 : vector<256xf32> to vector<1x256xf32>
    %34 = vector.extract_strided_slice %33 {offsets = [0, 0], sizes = [1, 128], strides = [1, 1]} : vector<1x256xf32> to vector<1x128xf32>
    %cst_19 = arith.constant 0.0333333351 : f32
    %35 = vector.broadcast %cst_19 : f32 to vector<1x128xf32>
    %36 = arith.mulf %34, %35 : vector<1x128xf32>
    %37 = vector.extract_strided_slice %33 {offsets = [0, 128], sizes = [1, 128], strides = [1, 1]} : vector<1x256xf32> to vector<1x128xf32>
    %cst_20 = arith.constant 0.0333333351 : f32
    %38 = vector.broadcast %cst_20 : f32 to vector<1x128xf32>
    %39 = arith.mulf %37, %38 : vector<1x128xf32>
    %40 = arith.mulf %36, %36 : vector<1x128xf32>
    %41 = arith.subf %39, %40 : vector<1x128xf32>
    %cst_21 = arith.constant 0.000000e+00 : f32
    %42 = vector.broadcast %cst_21 : f32 to vector<1x128xf32>
    %43 = arith.maximumf %41, %42 : vector<1x128xf32>
    %cst_22 = arith.constant 9.99999974E-6 : f32
    %44 = vector.broadcast %cst_22 : f32 to vector<1x128xf32>
    %45 = arith.addf %43, %44 : vector<1x128xf32>
    %46 = math.rsqrt %45 : vector<1x128xf32>
    %47 = arith.mulf %25, %46 : vector<1x128xf32>
    %48 = arith.mulf %36, %47 : vector<1x128xf32>
    %49 = arith.subf %27, %48 : vector<1x128xf32>
    %50 = vector.broadcast %47 : vector<1x128xf32> to vector<32x128xf32>
    %51 = arith.mulf %23, %50 : vector<32x128xf32>
    %52 = vector.broadcast %49 : vector<1x128xf32> to vector<32x128xf32>
    %53 = arith.addf %51, %52 : vector<32x128xf32>
    %cst_23 = arith.constant 0.000000e+00 : f32
    %54 = vector.broadcast %cst_23 : f32 to vector<32x128xf32>
    %55 = arith.maximumf %53, %54 : vector<32x128xf32>
    %56 = arith.truncf %55 : vector<32x128xf32> to vector<32x128xbf16>
    %c0_24 = arith.constant 0 : index
    %c0_25 = arith.constant 0 : index
    %c0_26 = arith.constant 0 : index
    %57 = vector.load %arg7[%c0_24, %c0_25, %c0_26] : memref<3x128x128xbf16, #tpu.memory_space<vmem>>, vector<1x128x128xbf16>
    %58 = vector.shape_cast %57 : vector<1x128x128xbf16> to vector<128x128xbf16>
    %cst_27 = arith.constant dense<0.000000e+00> : vector<32x128xf32>
    %59 = tpu.matmul %56, %58, %cst_27 {dimension_numbers = #tpu.dot_dimension_numbers<[1], [0], [0], [1], [0, 0, 1, 1], [], []>} : vector<32x128xbf16>, vector<128x128xbf16>, vector<32x128xf32> -> vector<32x128xf32>
    %c0_28 = arith.constant 0 : index
    %c0_29 = arith.constant 0 : index
    %c0_30 = arith.constant 0 : index
    %60 = vector.load %arg8[%c0_28, %c0_29, %c0_30] : memref<3x1x128xf32, #tpu.memory_space<vmem>>, vector<1x1x128xf32>
    %61 = vector.shape_cast %60 : vector<1x1x128xf32> to vector<1x128xf32>
    %62 = vector.broadcast %61 : vector<1x128xf32> to vector<32x128xf32>
    %63 = arith.addf %59, %62 : vector<32x128xf32>
    %c0_31 = arith.constant 0 : index
    %c0_32 = arith.constant 0 : index
    %c0_33 = arith.constant 0 : index
    %64 = vector.load %arg9[%c0_31, %c0_32, %c0_33] : memref<3x1x128xf32, #tpu.memory_space<vmem>>, vector<1x1x128xf32>
    %65 = vector.shape_cast %64 : vector<1x1x128xf32> to vector<1x128xf32>
    %c0_34 = arith.constant 0 : index
    %c0_35 = arith.constant 0 : index
    %c0_36 = arith.constant 0 : index
    %66 = vector.load %arg10[%c0_34, %c0_35, %c0_36] : memref<3x1x128xf32, #tpu.memory_space<vmem>>, vector<1x1x128xf32>
    %67 = vector.shape_cast %66 : vector<1x1x128xf32> to vector<1x128xf32>
    %68 = vector.broadcast %8 : vector<32x1xf32> to vector<32x128xf32>
    %69 = arith.mulf %63, %68 : vector<32x128xf32>
    %70 = arith.mulf %69, %63 : vector<32x128xf32>
    %71 = tpu.concatenate %69, %70 in 1 : vector<32x128xf32>, vector<32x128xf32> -> vector<32x256xf32>
    %cst_37 = arith.constant dense<0.000000e+00> : vector<256xf32>
    %72 = vector.multi_reduction <add>, %71, %cst_37 [0] : vector<32x256xf32> to vector<256xf32>
    %73 = vector.shape_cast %72 : vector<256xf32> to vector<1x256xf32>
    %74 = vector.extract_strided_slice %73 {offsets = [0, 0], sizes = [1, 128], strides = [1, 1]} : vector<1x256xf32> to vector<1x128xf32>
    %cst_38 = arith.constant 0.0333333351 : f32
    %75 = vector.broadcast %cst_38 : f32 to vector<1x128xf32>
    %76 = arith.mulf %74, %75 : vector<1x128xf32>
    %77 = vector.extract_strided_slice %73 {offsets = [0, 128], sizes = [1, 128], strides = [1, 1]} : vector<1x256xf32> to vector<1x128xf32>
    %cst_39 = arith.constant 0.0333333351 : f32
    %78 = vector.broadcast %cst_39 : f32 to vector<1x128xf32>
    %79 = arith.mulf %77, %78 : vector<1x128xf32>
    %80 = arith.mulf %76, %76 : vector<1x128xf32>
    %81 = arith.subf %79, %80 : vector<1x128xf32>
    %cst_40 = arith.constant 0.000000e+00 : f32
    %82 = vector.broadcast %cst_40 : f32 to vector<1x128xf32>
    %83 = arith.maximumf %81, %82 : vector<1x128xf32>
    %cst_41 = arith.constant 9.99999974E-6 : f32
    %84 = vector.broadcast %cst_41 : f32 to vector<1x128xf32>
    %85 = arith.addf %83, %84 : vector<1x128xf32>
    %86 = math.rsqrt %85 : vector<1x128xf32>
    %87 = arith.mulf %65, %86 : vector<1x128xf32>
    %88 = arith.mulf %76, %87 : vector<1x128xf32>
    %89 = arith.subf %67, %88 : vector<1x128xf32>
    %90 = vector.broadcast %87 : vector<1x128xf32> to vector<32x128xf32>
    %91 = arith.mulf %63, %90 : vector<32x128xf32>
    %92 = vector.broadcast %89 : vector<1x128xf32> to vector<32x128xf32>
    %93 = arith.addf %91, %92 : vector<32x128xf32>
    %cst_42 = arith.constant 0.000000e+00 : f32
    %94 = vector.broadcast %cst_42 : f32 to vector<32x128xf32>
    %95 = arith.maximumf %93, %94 : vector<32x128xf32>
    %96 = arith.truncf %95 : vector<32x128xf32> to vector<32x128xbf16>
    %cst_43 = arith.constant dense<0.000000e+00> : vector<32x128xf32>
    %97 = tpu.matmul %3, %96, %cst_43 {dimension_numbers = #tpu.dot_dimension_numbers<[1], [0], [0], [1], [0, 0, 1, 1], [], []>} : vector<32x32xbf16>, vector<32x128xbf16>, vector<32x128xf32> -> vector<32x128xf32>
    %c1 = arith.constant 1 : index
    %98 = memref.load %arg2[%c1] : memref<3xf32, #tpu.memory_space<smem>>
    %cst_44 = arith.constant 1.000000e+00 : f32
    %99 = arith.addf %cst_44, %98 : f32
    %100 = vector.broadcast %99 : f32 to vector<32x128xf32>
    %101 = arith.mulf %100, %95 : vector<32x128xf32>
    %102 = arith.addf %101, %97 : vector<32x128xf32>
    %103 = arith.truncf %102 : vector<32x128xf32> to vector<32x128xbf16>
    %c1_45 = arith.constant 1 : index
    %c0_46 = arith.constant 0 : index
    %c0_47 = arith.constant 0 : index
    %104 = vector.load %arg3[%c1_45, %c0_46, %c0_47] : memref<3x128x128xbf16, #tpu.memory_space<vmem>>, vector<1x128x128xbf16>
    %105 = vector.shape_cast %104 : vector<1x128x128xbf16> to vector<128x128xbf16>
    %cst_48 = arith.constant dense<0.000000e+00> : vector<32x128xf32>
    %106 = tpu.matmul %103, %105, %cst_48 {dimension_numbers = #tpu.dot_dimension_numbers<[1], [0], [0], [1], [0, 0, 1, 1], [], []>} : vector<32x128xbf16>, vector<128x128xbf16>, vector<32x128xf32> -> vector<32x128xf32>
    %c1_49 = arith.constant 1 : index
    %c0_50 = arith.constant 0 : index
    %c0_51 = arith.constant 0 : index
    %107 = vector.load %arg4[%c1_49, %c0_50, %c0_51] : memref<3x1x128xf32, #tpu.memory_space<vmem>>, vector<1x1x128xf32>
    %108 = vector.shape_cast %107 : vector<1x1x128xf32> to vector<1x128xf32>
    %109 = vector.broadcast %108 : vector<1x128xf32> to vector<32x128xf32>
    %110 = arith.addf %106, %109 : vector<32x128xf32>
    %c1_52 = arith.constant 1 : index
    %c0_53 = arith.constant 0 : index
    %c0_54 = arith.constant 0 : index
    %111 = vector.load %arg5[%c1_52, %c0_53, %c0_54] : memref<3x1x128xf32, #tpu.memory_space<vmem>>, vector<1x1x128xf32>
    %112 = vector.shape_cast %111 : vector<1x1x128xf32> to vector<1x128xf32>
    %c1_55 = arith.constant 1 : index
    %c0_56 = arith.constant 0 : index
    %c0_57 = arith.constant 0 : index
    %113 = vector.load %arg6[%c1_55, %c0_56, %c0_57] : memref<3x1x128xf32, #tpu.memory_space<vmem>>, vector<1x1x128xf32>
    %114 = vector.shape_cast %113 : vector<1x1x128xf32> to vector<1x128xf32>
    %115 = vector.broadcast %8 : vector<32x1xf32> to vector<32x128xf32>
    %116 = arith.mulf %110, %115 : vector<32x128xf32>
    %117 = arith.mulf %116, %110 : vector<32x128xf32>
    %118 = tpu.concatenate %116, %117 in 1 : vector<32x128xf32>, vector<32x128xf32> -> vector<32x256xf32>
    %cst_58 = arith.constant dense<0.000000e+00> : vector<256xf32>
    %119 = vector.multi_reduction <add>, %118, %cst_58 [0] : vector<32x256xf32> to vector<256xf32>
    %120 = vector.shape_cast %119 : vector<256xf32> to vector<1x256xf32>
    %121 = vector.extract_strided_slice %120 {offsets = [0, 0], sizes = [1, 128], strides = [1, 1]} : vector<1x256xf32> to vector<1x128xf32>
    %cst_59 = arith.constant 0.0333333351 : f32
    %122 = vector.broadcast %cst_59 : f32 to vector<1x128xf32>
    %123 = arith.mulf %121, %122 : vector<1x128xf32>
    %124 = vector.extract_strided_slice %120 {offsets = [0, 128], sizes = [1, 128], strides = [1, 1]} : vector<1x256xf32> to vector<1x128xf32>
    %cst_60 = arith.constant 0.0333333351 : f32
    %125 = vector.broadcast %cst_60 : f32 to vector<1x128xf32>
    %126 = arith.mulf %124, %125 : vector<1x128xf32>
    %127 = arith.mulf %123, %123 : vector<1x128xf32>
    %128 = arith.subf %126, %127 : vector<1x128xf32>
    %cst_61 = arith.constant 0.000000e+00 : f32
    %129 = vector.broadcast %cst_61 : f32 to vector<1x128xf32>
    %130 = arith.maximumf %128, %129 : vector<1x128xf32>
    %cst_62 = arith.constant 9.99999974E-6 : f32
    %131 = vector.broadcast %cst_62 : f32 to vector<1x128xf32>
    %132 = arith.addf %130, %131 : vector<1x128xf32>
    %133 = math.rsqrt %132 : vector<1x128xf32>
    %134 = arith.mulf %112, %133 : vector<1x128xf32>
    %135 = arith.mulf %123, %134 : vector<1x128xf32>
    %136 = arith.subf %114, %135 : vector<1x128xf32>
    %137 = vector.broadcast %134 : vector<1x128xf32> to vector<32x128xf32>
    %138 = arith.mulf %110, %137 : vector<32x128xf32>
    %139 = vector.broadcast %136 : vector<1x128xf32> to vector<32x128xf32>
    %140 = arith.addf %138, %139 : vector<32x128xf32>
    %cst_63 = arith.constant 0.000000e+00 : f32
    %141 = vector.broadcast %cst_63 : f32 to vector<32x128xf32>
    %142 = arith.maximumf %140, %141 : vector<32x128xf32>
    %143 = arith.truncf %142 : vector<32x128xf32> to vector<32x128xbf16>
    %c1_64 = arith.constant 1 : index
    %c0_65 = arith.constant 0 : index
    %c0_66 = arith.constant 0 : index
    %144 = vector.load %arg7[%c1_64, %c0_65, %c0_66] : memref<3x128x128xbf16, #tpu.memory_space<vmem>>, vector<1x128x128xbf16>
    %145 = vector.shape_cast %144 : vector<1x128x128xbf16> to vector<128x128xbf16>
    %cst_67 = arith.constant dense<0.000000e+00> : vector<32x128xf32>
    %146 = tpu.matmul %143, %145, %cst_67 {dimension_numbers = #tpu.dot_dimension_numbers<[1], [0], [0], [1], [0, 0, 1, 1], [], []>} : vector<32x128xbf16>, vector<128x128xbf16>, vector<32x128xf32> -> vector<32x128xf32>
    %c1_68 = arith.constant 1 : index
    %c0_69 = arith.constant 0 : index
    %c0_70 = arith.constant 0 : index
    %147 = vector.load %arg8[%c1_68, %c0_69, %c0_70] : memref<3x1x128xf32, #tpu.memory_space<vmem>>, vector<1x1x128xf32>
    %148 = vector.shape_cast %147 : vector<1x1x128xf32> to vector<1x128xf32>
    %149 = vector.broadcast %148 : vector<1x128xf32> to vector<32x128xf32>
    %150 = arith.addf %146, %149 : vector<32x128xf32>
    %c1_71 = arith.constant 1 : index
    %c0_72 = arith.constant 0 : index
    %c0_73 = arith.constant 0 : index
    %151 = vector.load %arg9[%c1_71, %c0_72, %c0_73] : memref<3x1x128xf32, #tpu.memory_space<vmem>>, vector<1x1x128xf32>
    %152 = vector.shape_cast %151 : vector<1x1x128xf32> to vector<1x128xf32>
    %c1_74 = arith.constant 1 : index
    %c0_75 = arith.constant 0 : index
    %c0_76 = arith.constant 0 : index
    %153 = vector.load %arg10[%c1_74, %c0_75, %c0_76] : memref<3x1x128xf32, #tpu.memory_space<vmem>>, vector<1x1x128xf32>
    %154 = vector.shape_cast %153 : vector<1x1x128xf32> to vector<1x128xf32>
    %155 = vector.broadcast %8 : vector<32x1xf32> to vector<32x128xf32>
    %156 = arith.mulf %150, %155 : vector<32x128xf32>
    %157 = arith.mulf %156, %150 : vector<32x128xf32>
    %158 = tpu.concatenate %156, %157 in 1 : vector<32x128xf32>, vector<32x128xf32> -> vector<32x256xf32>
    %cst_77 = arith.constant dense<0.000000e+00> : vector<256xf32>
    %159 = vector.multi_reduction <add>, %158, %cst_77 [0] : vector<32x256xf32> to vector<256xf32>
    %160 = vector.shape_cast %159 : vector<256xf32> to vector<1x256xf32>
    %161 = vector.extract_strided_slice %160 {offsets = [0, 0], sizes = [1, 128], strides = [1, 1]} : vector<1x256xf32> to vector<1x128xf32>
    %cst_78 = arith.constant 0.0333333351 : f32
    %162 = vector.broadcast %cst_78 : f32 to vector<1x128xf32>
    %163 = arith.mulf %161, %162 : vector<1x128xf32>
    %164 = vector.extract_strided_slice %160 {offsets = [0, 128], sizes = [1, 128], strides = [1, 1]} : vector<1x256xf32> to vector<1x128xf32>
    %cst_79 = arith.constant 0.0333333351 : f32
    %165 = vector.broadcast %cst_79 : f32 to vector<1x128xf32>
    %166 = arith.mulf %164, %165 : vector<1x128xf32>
    %167 = arith.mulf %163, %163 : vector<1x128xf32>
    %168 = arith.subf %166, %167 : vector<1x128xf32>
    %cst_80 = arith.constant 0.000000e+00 : f32
    %169 = vector.broadcast %cst_80 : f32 to vector<1x128xf32>
    %170 = arith.maximumf %168, %169 : vector<1x128xf32>
    %cst_81 = arith.constant 9.99999974E-6 : f32
    %171 = vector.broadcast %cst_81 : f32 to vector<1x128xf32>
    %172 = arith.addf %170, %171 : vector<1x128xf32>
    %173 = math.rsqrt %172 : vector<1x128xf32>
    %174 = arith.mulf %152, %173 : vector<1x128xf32>
    %175 = arith.mulf %163, %174 : vector<1x128xf32>
    %176 = arith.subf %154, %175 : vector<1x128xf32>
    %177 = vector.broadcast %174 : vector<1x128xf32> to vector<32x128xf32>
    %178 = arith.mulf %150, %177 : vector<32x128xf32>
    %179 = vector.broadcast %176 : vector<1x128xf32> to vector<32x128xf32>
    %180 = arith.addf %178, %179 : vector<32x128xf32>
    %cst_82 = arith.constant 0.000000e+00 : f32
    %181 = vector.broadcast %cst_82 : f32 to vector<32x128xf32>
    %182 = arith.maximumf %180, %181 : vector<32x128xf32>
    %183 = arith.maximumf %95, %182 : vector<32x128xf32>
    %184 = arith.truncf %182 : vector<32x128xf32> to vector<32x128xbf16>
    %cst_83 = arith.constant dense<0.000000e+00> : vector<32x128xf32>
    %185 = tpu.matmul %3, %184, %cst_83 {dimension_numbers = #tpu.dot_dimension_numbers<[1], [0], [0], [1], [0, 0, 1, 1], [], []>} : vector<32x32xbf16>, vector<32x128xbf16>, vector<32x128xf32> -> vector<32x128xf32>
    %c2 = arith.constant 2 : index
    %186 = memref.load %arg2[%c2] : memref<3xf32, #tpu.memory_space<smem>>
    %cst_84 = arith.constant 1.000000e+00 : f32
    %187 = arith.addf %cst_84, %186 : f32
    %188 = vector.broadcast %187 : f32 to vector<32x128xf32>
    %189 = arith.mulf %188, %182 : vector<32x128xf32>
    %190 = arith.addf %189, %185 : vector<32x128xf32>
    %191 = arith.truncf %190 : vector<32x128xf32> to vector<32x128xbf16>
    %c2_85 = arith.constant 2 : index
    %c0_86 = arith.constant 0 : index
    %c0_87 = arith.constant 0 : index
    %192 = vector.load %arg3[%c2_85, %c0_86, %c0_87] : memref<3x128x128xbf16, #tpu.memory_space<vmem>>, vector<1x128x128xbf16>
    %193 = vector.shape_cast %192 : vector<1x128x128xbf16> to vector<128x128xbf16>
    %cst_88 = arith.constant dense<0.000000e+00> : vector<32x128xf32>
    %194 = tpu.matmul %191, %193, %cst_88 {dimension_numbers = #tpu.dot_dimension_numbers<[1], [0], [0], [1], [0, 0, 1, 1], [], []>} : vector<32x128xbf16>, vector<128x128xbf16>, vector<32x128xf32> -> vector<32x128xf32>
    %c2_89 = arith.constant 2 : index
    %c0_90 = arith.constant 0 : index
    %c0_91 = arith.constant 0 : index
    %195 = vector.load %arg4[%c2_89, %c0_90, %c0_91] : memref<3x1x128xf32, #tpu.memory_space<vmem>>, vector<1x1x128xf32>
    %196 = vector.shape_cast %195 : vector<1x1x128xf32> to vector<1x128xf32>
    %197 = vector.broadcast %196 : vector<1x128xf32> to vector<32x128xf32>
    %198 = arith.addf %194, %197 : vector<32x128xf32>
    %c2_92 = arith.constant 2 : index
    %c0_93 = arith.constant 0 : index
    %c0_94 = arith.constant 0 : index
    %199 = vector.load %arg5[%c2_92, %c0_93, %c0_94] : memref<3x1x128xf32, #tpu.memory_space<vmem>>, vector<1x1x128xf32>
    %200 = vector.shape_cast %199 : vector<1x1x128xf32> to vector<1x128xf32>
    %c2_95 = arith.constant 2 : index
    %c0_96 = arith.constant 0 : index
    %c0_97 = arith.constant 0 : index
    %201 = vector.load %arg6[%c2_95, %c0_96, %c0_97] : memref<3x1x128xf32, #tpu.memory_space<vmem>>, vector<1x1x128xf32>
    %202 = vector.shape_cast %201 : vector<1x1x128xf32> to vector<1x128xf32>
    %203 = vector.broadcast %8 : vector<32x1xf32> to vector<32x128xf32>
    %204 = arith.mulf %198, %203 : vector<32x128xf32>
    %205 = arith.mulf %204, %198 : vector<32x128xf32>
    %206 = tpu.concatenate %204, %205 in 1 : vector<32x128xf32>, vector<32x128xf32> -> vector<32x256xf32>
    %cst_98 = arith.constant dense<0.000000e+00> : vector<256xf32>
    %207 = vector.multi_reduction <add>, %206, %cst_98 [0] : vector<32x256xf32> to vector<256xf32>
    %208 = vector.shape_cast %207 : vector<256xf32> to vector<1x256xf32>
    %209 = vector.extract_strided_slice %208 {offsets = [0, 0], sizes = [1, 128], strides = [1, 1]} : vector<1x256xf32> to vector<1x128xf32>
    %cst_99 = arith.constant 0.0333333351 : f32
    %210 = vector.broadcast %cst_99 : f32 to vector<1x128xf32>
    %211 = arith.mulf %209, %210 : vector<1x128xf32>
    %212 = vector.extract_strided_slice %208 {offsets = [0, 128], sizes = [1, 128], strides = [1, 1]} : vector<1x256xf32> to vector<1x128xf32>
    %cst_100 = arith.constant 0.0333333351 : f32
    %213 = vector.broadcast %cst_100 : f32 to vector<1x128xf32>
    %214 = arith.mulf %212, %213 : vector<1x128xf32>
    %215 = arith.mulf %211, %211 : vector<1x128xf32>
    %216 = arith.subf %214, %215 : vector<1x128xf32>
    %cst_101 = arith.constant 0.000000e+00 : f32
    %217 = vector.broadcast %cst_101 : f32 to vector<1x128xf32>
    %218 = arith.maximumf %216, %217 : vector<1x128xf32>
    %cst_102 = arith.constant 9.99999974E-6 : f32
    %219 = vector.broadcast %cst_102 : f32 to vector<1x128xf32>
    %220 = arith.addf %218, %219 : vector<1x128xf32>
    %221 = math.rsqrt %220 : vector<1x128xf32>
    %222 = arith.mulf %200, %221 : vector<1x128xf32>
    %223 = arith.mulf %211, %222 : vector<1x128xf32>
    %224 = arith.subf %202, %223 : vector<1x128xf32>
    %225 = vector.broadcast %222 : vector<1x128xf32> to vector<32x128xf32>
    %226 = arith.mulf %198, %225 : vector<32x128xf32>
    %227 = vector.broadcast %224 : vector<1x128xf32> to vector<32x128xf32>
    %228 = arith.addf %226, %227 : vector<32x128xf32>
    %cst_103 = arith.constant 0.000000e+00 : f32
    %229 = vector.broadcast %cst_103 : f32 to vector<32x128xf32>
    %230 = arith.maximumf %228, %229 : vector<32x128xf32>
    %231 = arith.truncf %230 : vector<32x128xf32> to vector<32x128xbf16>
    %c2_104 = arith.constant 2 : index
    %c0_105 = arith.constant 0 : index
    %c0_106 = arith.constant 0 : index
    %232 = vector.load %arg7[%c2_104, %c0_105, %c0_106] : memref<3x128x128xbf16, #tpu.memory_space<vmem>>, vector<1x128x128xbf16>
    %233 = vector.shape_cast %232 : vector<1x128x128xbf16> to vector<128x128xbf16>
    %cst_107 = arith.constant dense<0.000000e+00> : vector<32x128xf32>
    %234 = tpu.matmul %231, %233, %cst_107 {dimension_numbers = #tpu.dot_dimension_numbers<[1], [0], [0], [1], [0, 0, 1, 1], [], []>} : vector<32x128xbf16>, vector<128x128xbf16>, vector<32x128xf32> -> vector<32x128xf32>
    %c2_108 = arith.constant 2 : index
    %c0_109 = arith.constant 0 : index
    %c0_110 = arith.constant 0 : index
    %235 = vector.load %arg8[%c2_108, %c0_109, %c0_110] : memref<3x1x128xf32, #tpu.memory_space<vmem>>, vector<1x1x128xf32>
    %236 = vector.shape_cast %235 : vector<1x1x128xf32> to vector<1x128xf32>
    %237 = vector.broadcast %236 : vector<1x128xf32> to vector<32x128xf32>
    %238 = arith.addf %234, %237 : vector<32x128xf32>
    %c2_111 = arith.constant 2 : index
    %c0_112 = arith.constant 0 : index
    %c0_113 = arith.constant 0 : index
    %239 = vector.load %arg9[%c2_111, %c0_112, %c0_113] : memref<3x1x128xf32, #tpu.memory_space<vmem>>, vector<1x1x128xf32>
    %240 = vector.shape_cast %239 : vector<1x1x128xf32> to vector<1x128xf32>
    %c2_114 = arith.constant 2 : index
    %c0_115 = arith.constant 0 : index
    %c0_116 = arith.constant 0 : index
    %241 = vector.load %arg10[%c2_114, %c0_115, %c0_116] : memref<3x1x128xf32, #tpu.memory_space<vmem>>, vector<1x1x128xf32>
    %242 = vector.shape_cast %241 : vector<1x1x128xf32> to vector<1x128xf32>
    %243 = vector.broadcast %8 : vector<32x1xf32> to vector<32x128xf32>
    %244 = arith.mulf %238, %243 : vector<32x128xf32>
    %245 = arith.mulf %244, %238 : vector<32x128xf32>
    %246 = tpu.concatenate %244, %245 in 1 : vector<32x128xf32>, vector<32x128xf32> -> vector<32x256xf32>
    %cst_117 = arith.constant dense<0.000000e+00> : vector<256xf32>
    %247 = vector.multi_reduction <add>, %246, %cst_117 [0] : vector<32x256xf32> to vector<256xf32>
    %248 = vector.shape_cast %247 : vector<256xf32> to vector<1x256xf32>
    %249 = vector.extract_strided_slice %248 {offsets = [0, 0], sizes = [1, 128], strides = [1, 1]} : vector<1x256xf32> to vector<1x128xf32>
    %cst_118 = arith.constant 0.0333333351 : f32
    %250 = vector.broadcast %cst_118 : f32 to vector<1x128xf32>
    %251 = arith.mulf %249, %250 : vector<1x128xf32>
    %252 = vector.extract_strided_slice %248 {offsets = [0, 128], sizes = [1, 128], strides = [1, 1]} : vector<1x256xf32> to vector<1x128xf32>
    %cst_119 = arith.constant 0.0333333351 : f32
    %253 = vector.broadcast %cst_119 : f32 to vector<1x128xf32>
    %254 = arith.mulf %252, %253 : vector<1x128xf32>
    %255 = arith.mulf %251, %251 : vector<1x128xf32>
    %256 = arith.subf %254, %255 : vector<1x128xf32>
    %cst_120 = arith.constant 0.000000e+00 : f32
    %257 = vector.broadcast %cst_120 : f32 to vector<1x128xf32>
    %258 = arith.maximumf %256, %257 : vector<1x128xf32>
    %cst_121 = arith.constant 9.99999974E-6 : f32
    %259 = vector.broadcast %cst_121 : f32 to vector<1x128xf32>
    %260 = arith.addf %258, %259 : vector<1x128xf32>
    %261 = math.rsqrt %260 : vector<1x128xf32>
    %262 = arith.mulf %240, %261 : vector<1x128xf32>
    %263 = arith.mulf %251, %262 : vector<1x128xf32>
    %264 = arith.subf %242, %263 : vector<1x128xf32>
    %265 = vector.broadcast %262 : vector<1x128xf32> to vector<32x128xf32>
    %266 = arith.mulf %238, %265 : vector<32x128xf32>
    %267 = vector.broadcast %264 : vector<1x128xf32> to vector<32x128xf32>
    %268 = arith.addf %266, %267 : vector<32x128xf32>
    %cst_122 = arith.constant 0.000000e+00 : f32
    %269 = vector.broadcast %cst_122 : f32 to vector<32x128xf32>
    %270 = arith.maximumf %268, %269 : vector<32x128xf32>
    %271 = arith.maximumf %183, %270 : vector<32x128xf32>
    %c0_123 = arith.constant 0 : index
    %c0_124 = arith.constant 0 : index
    %272 = vector.load %arg11[%c0_123, %c0_124] : memref<32x128xf32, #tpu.memory_space<vmem>>, vector<32x128xf32>
    tpu.vector_store %arg11[%c0_123, %c0_124], %271 {strides = array<i32>} : memref<32x128xf32, #tpu.memory_space<vmem>>, vector<32x128xf32>,
    return
  }
}

</mosaic_0001>

<bundles_post_ra>
// kernel: tpu_custom_call.1
= control target key start
LH: loop header
LB: loop body
LE: loop exit
PB: predicated region body
PF: predicated region fallthrough
CT: control target
= control target key end

     0   :  { %16 = vsyncpa [#allocation3], 0  ;;  %s2053_s0 = inlined_call_operand.hbm [shape: f32[32,128], index: 0, kind: input, shape index: {}]   ;;  %s2054_s1 = inlined_call_operand.hbm [shape: s8[32,32], index: 1, kind: input, shape index: {}]   ;;  %s2055_s2 = inlined_call_operand.hbm [shape: f32[3], index: 2, kind: input, shape index: {}]   ;;  %s2056_s3 = inlined_call_operand.hbm [shape: bf16[3,128,128], index: 3, kind: input, shape index: {}]   ;;  %s2057_s4 = inlined_call_operand.vmem [shape: f32[3,1,128], index: 4, kind: input, shape index: {}]   ;;  %s2058_s5 = inlined_call_operand.hbm [shape: f32[3,1,128], index: 5, kind: input, shape index: {}]   ;;  %s2059_s6 = inlined_call_operand.hbm [shape: f32[3,1,128], index: 6, kind: input, shape index: {}]   ;;  %s2060_s7 = inlined_call_operand.hbm [shape: bf16[3,128,128], index: 7, kind: input, shape index: {}]   ;;  %s2061_s8 = inlined_call_operand.vmem [shape: f32[3,1,128], index: 8, kind: input, shape index: {}]   ;;  %s2062_s9 = inlined_call_operand.hbm [shape: f32[3,1,128], index: 9, kind: input, shape index: {}]   ;;  %s2063_s10 = inlined_call_operand.vmem [shape: f32[3,1,128], index: 10, kind: input, shape index: {}]   ;;  %s2064_s11 = inlined_call_operand.hbm [shape: f32[32,128], index: 11, kind: output, shape index: {}]  }
   0x1   :  { %17 = vsyncpa [#allocation7], 0 }
   0x2   :  { %18 = vsyncpa [#allocation5], 0 }
   0x3   :  { %19 = vsyncpa [#allocation11], 0 }
   0x4   :  { %20 = vsyncpa [#allocation14], 0  ;;  %s40_s19 = sshll.u32 %s2054_s1, 4  ;;  %s41_s19 = int_to_ptr.hbm [resolvable:$true] %s40_s19 }
   0x5   :  { %21 = vsyncpa [#allocation4], 0  ;;  %s1785_s20 = smov [#allocation6]   ;;  %s74_s24 = sshll.u32 %s2058_s5, 4  ;;  %s75_s24 = int_to_ptr.hbm [resolvable:$true] %s74_s24 }
   0x6   :  { %s42_s21 = sshll.u32 %s1785_s20, 4  ;;  %s1786_s25 = smov [#allocation10]   ;;  %s43_s21 = int_to_ptr.vmem [resolvable:$true] %s42_s21 }
   0x7   :  { %45 = dma.hbm_to_vmem [thread:$0]  %s41_s19, 128, %s43_s21, [#allocation7]  }
   0x8   :  { %s76_s26 = sshll.u32 %s1786_s25, 4  ;;  %s1787_s27 = smov 16   ;;  %s77_s26 = int_to_ptr.vmem [resolvable:$true] %s76_s26 }
   0x9   :  { %s1788_s28 = smov 1   ;;  %s100_s30 = sshll.u32 %s2060_s7, 4  ;;  %s101_s30 = int_to_ptr.hbm [resolvable:$true] %s100_s30 }
   0xa   :  { %82 = dma.hbm_to_vmem [thread:$0]  %s75_s24, 48, %s77_s26, [#allocation11], %s1787_s27, %s1787_s27, %s1788_s28  }
   0xb   :  { %s1789_s12 = smov [#allocation13]   ;;  %s26_s15 = sshll.u32 %s2053_s0, 4  ;;  %s27_s15 = int_to_ptr.hbm [resolvable:$true] %s26_s15 }
   0xc   :  { %s102_s13 = sshll.u32 %s1789_s12, 4  ;;  %s1790_s16 = smov 64   ;;  %s103_s13 = int_to_ptr.vmem [resolvable:$true] %s102_s13 }
   0xd   :  { %s1791_s17 = smov 4   ;;  %s1792_s18 = smov [#allocation2]  }
   0xe   :  { %108 = dma.hbm_to_vmem [thread:$0]  %s101_s30, 3072, %s103_s13, [#allocation14], %s1790_s16, %s1790_s16, %s1791_s17  }
   0xf   :  { %s28_s19 = sshll.u32 %s1792_s18, 4  ;;  %s1793_s20 = smov 128   ;;  %s29_s19 = int_to_ptr.vmem [resolvable:$true] %s28_s19 }
  0x10   :  { %s1794_s21 = smov 8   ;;  %s51_s23 = sshll.u32 %s2055_s2, 4  ;;  %s52_s23 = int_to_ptr.hbm [resolvable:$true] %s51_s23 }
  0x11   :  { %34 = dma.hbm_to_vmem [thread:$0]  %s27_s15, 512, %s29_s19, [#allocation3], %s1793_s20, %s1793_s20, %s1794_s21  }
  0x12   :  { %s59_s25 = sshll.u32 %s2056_s3, 4  ;;  %s1795_s26 = smov [#allocation8]   ;;  %s60_s25 = int_to_ptr.hbm [resolvable:$true] %s59_s25 }
  0x13   :  { %54 = dma.hbm_to_smem %s52_s23, 16, %s1795_s26, [#allocation5]  }
  0x14   :  { %s1796_s1 = smov [#allocation9]   ;;  %s87_s13 = sshll.u32 %s2059_s6, 4  ;;  %s88_s13 = int_to_ptr.hbm [resolvable:$true] %s87_s13 }
  0x15   :  { %s61_s29 = sshll.u32 %s1796_s1, 4  ;;  %s115_s2 = sshll.u32 %s2062_s9, 4  ;;  %s62_s29 = int_to_ptr.vmem [resolvable:$true] %s61_s29  ;;  %s116_s2 = int_to_ptr.hbm [resolvable:$true] %s115_s2 }
  0x16   :  { %67 = dma.hbm_to_vmem [thread:$0]  %s60_s25, 3072, %s62_s29, [#allocation7], %s1790_s16, %s1790_s16, %s1791_s17  }
  0x17   :  { %s1797_s15 = smov [#allocation12]   ;;  %s1798_s3 = smov [#allocation15]  }
  0x18   :  { %s89_s18 = sshll.u32 %s1797_s15, 4  ;;  %s117_s19 = sshll.u32 %s1798_s3, 4  ;;  %s90_s18 = int_to_ptr.vmem [resolvable:$true] %s89_s18  ;;  %s118_s19 = int_to_ptr.vmem [resolvable:$true] %s117_s19 }
  0x19   :  { %95 = dma.hbm_to_vmem [thread:$0]  %s88_s13, 48, %s90_s18, [#allocation11], %s1787_s27, %s1787_s27, %s1788_s28  }
  0x1a   :  { %123 = dma.hbm_to_vmem [thread:$0]  %s116_s2, 48, %s118_s19, [#allocation14], %s1787_s27, %s1787_s27, %s1788_s28  }
  0x1b   :  { %1771 = dma.done.wait [#allocation3], 512  }
  0x1c   :  { %1772 = vsyncadd [#allocation3], 4294966784 }
  0x1d   :  { %1773 = dma.done.wait [#allocation7], 128  }
  0x1e   :  { %1774 = vsyncadd [#allocation7], 4294967168 }
  0x1f   :  { %1775 = dma.done.wait [#allocation5], 16  }
  0x20   :  { %1776 = vsyncadd [#allocation5], 4294967280 }
  0x21   :  { %1777 = dma.done.wait [#allocation7], 3072  }
  0x22   :  { %1778 = vsyncadd [#allocation7], 4294964224 }
  0x23   :  { %1779 = dma.done.wait [#allocation11], 96  }
  0x24   :  { %1780 = vsyncadd [#allocation11], 4294967200 }
  0x25   :  { %1781 = dma.done.wait [#allocation14], 3120  }
  0x26   :  { %1782 = vsyncadd [#allocation14], 4294964176 }
  0x27   :  { %158 = sfence }
  0x28   :  { %v162_v0 = vld [vmem:[#allocation2 + $0x10] sm:$0xff]  ;;  %v163_v1 = vld [vmem:[#allocation2 + $0x18] sm:$0xff]  ;;  %v160_v2 = vld [vmem:[#allocation2] sm:$0xff]  ;;  %vm194_vm0 = vcmask 261120   ;;  %s220_s6 = sld [smem:[#allocation8]]  ;;  %v175_v42 = vlaneseq  ;;  %v1799_v52 = vmov 0.0  }
  0x29   :  { %v193_v3 = vpack.c.bf16 %v163_v1, %v162_v0  ;;  %v161_v4 = vld [vmem:[#allocation2 + $0x8] sm:$0xff]  ;;  %v164_v5 = vld [vmem:[#allocation6] sm:$0xff]  ;;  %v1483_v10 = vld [vmem:[#allocation9 + $0x30] sm:$0xff]  ;;  %s1339_s23 = sld [smem:[#allocation8 + $0x1]] }
  0x2a   :  { %v1484_v6 = vld [vmem:[#allocation9 + $0x38] sm:$0xff]  ;;  %v165_v7 = vunpack.c.0.s8 %v164_v5  ;;  %v166_v8 = vunpack.c.1.s8 %v164_v5  ;;  %v192_v9 = vpack.c.bf16 %v161_v4, %v160_v2  ;;  %v1482_v14 = vld [vmem:[#allocation9 + $0x28] sm:$0xff]  ;;  %v1481_v15 = vld [vmem:[#allocation9 + $0x20] sm:$0xff]  ;;  %v167_v16 = vunpack.c.2.s8 %v164_v5  ;;  %s1409_s12 = sld [smem:[#allocation8 + $0x2]] }
  0x2b   :  { %207 = vmatpush.bf16.msra.mxu0 %v193_v3  ;;  %301 = vmatpush.bf16.msra.mxu1 %v1484_v6  ;;  %v168_v17 = vunpack.c.3.s8 %v164_v5  ;;  %v1480_v18 = vld [vmem:[#allocation9 + $0x18] sm:$0xff]  ;;  %v1479_v22 = vld [vmem:[#allocation9 + $0x10] sm:$0xff]  ;;  %v1478_v23 = vld [vmem:[#allocation9 + $0x8] sm:$0xff]  ;;  %v176_v43 = vshrl.u32 %v175_v42, 7 }
  0x2c   :  { %v169_v11 = vcvt.s32.f32 %v165_v7  ;;  %v170_v12 = vcvt.s32.f32 %v166_v8  ;;  %v171_v19 = vcvt.s32.f32 %v167_v16  ;;  %v1477_v24 = vld [vmem:[#allocation9] sm:$0xff]  ;;  %v1549_v45 = vld [vmem:[%s2057_s4] ss:$0 sm:$0xff]  ;;  %v1490_v63 = vld [vmem:[#allocation13 + $0x28] sm:$0xff] }
  0x2d   :  { %v172_v20 = vcvt.s32.f32 %v168_v17  ;;  %v179_v46 = vadd.s32 24, %v176_v43  ;;  %v1492_v48 = vld [vmem:[#allocation13 + $0x38] sm:$0xff]  ;;  %v1491_v55 = vld [vmem:[#allocation13 + $0x30] sm:$0xff]  ;;  %v1489_v5 = vld [vmem:[#allocation13 + $0x20] sm:$0xff] }
  0x2e   :  { %v1897_v13 = vpack.c.bf16 %v170_v12, %v169_v11  ;;  %s221_s9 = sadd.f32 1.0, %s220_s6  ;;  %455 = vmatpush.bf16.msra.mxu2 %v1492_v48  ;;  %v1487_v16 = vld [vmem:[#allocation13 + $0x10] sm:$0xff]  ;;  %s1253_s6 = sshll.u32 %s2064_s11, 4  ;;  %s1254_s6 = int_to_ptr.hbm [resolvable:$true] %s1253_s6 }
  0x2f   :  { %208 = vmatpush.bf16.msra.mxu0 %v192_v9  ;;  %302 = vmatpush.bf16.msra.mxu1 %v1483_v10  ;;  %v1901_v21 = vpack.c.bf16 %v172_v20, %v171_v19  ;;  %vm183_vm1 = vcmp.lt.s32.totalorder %v179_v46, 30  ;;  %v1488_v10 = vld [vmem:[#allocation13 + $0x18] sm:$0xff]  ;;  %s561_s24 = sadd.f32 1.0, %s1339_s23 }
  0x30   :  { %v222_v26 = vstv %s221_s9  ;;  %v1916_v53 = vsel %vm183_vm1, 1.0, %v1799_v52  ;;  %s913_s13 = sadd.f32 1.0, %s1409_s12 }
  0x31   :  { %v223_v27 = vmul.f32 %v222_v26, %v160_v2  ;;  %v224_v28 = vmul.f32 %v222_v26, %v161_v4  ;;  %v225_v34 = vmul.f32 %v222_v26, %v162_v0  ;;  %v226_v35 = vmul.f32 %v222_v26, %v163_v1 }
  0x32   :  { %1271 = vmatmul.msk.bf16.vlgmr.msra.gmra.mxu0 %vm194_vm0, %v1897_v13  ;;  %456 = vmatpush.bf16.msra.mxu2 %v1491_v55 }
  0x33   :  { %303 = vmatpush.bf16.msra.mxu1 %v1482_v14 }
  0x36   :  { %457 = vmatpush.bf16.msra.mxu2 %v1490_v63 }
  0x37   :  { %304 = vmatpush.bf16.msra.mxu1 %v1481_v15 }
  0x3a   :  { %458 = vmatpush.bf16.msra.mxu2 %v1489_v5 }
  0x3b   :  { %305 = vmatpush.bf16.msra.mxu1 %v1480_v18 }
  0x3e   :  { %459 = vmatpush.bf16.msra.mxu2 %v1488_v10 }
  0x3f   :  { %306 = vmatpush.bf16.msra.mxu1 %v1479_v22  ;;  %v1486_v22 = vld [vmem:[#allocation13 + $0x8] sm:$0xff] }
  0x42   :  { %1272 = vmatmul.msk.bf16.gmra.mxu0 %vm194_vm0, %v1901_v21  ;;  %460 = vmatpush.bf16.msra.mxu2 %v1487_v16 }
  0x43   :  { %307 = vmatpush.bf16.msra.mxu1 %v1478_v23 }
  0x46   :  { %461 = vmatpush.bf16.msra.mxu2 %v1486_v22 }
  0x47   :  { %308 = vmatpush.bf16.msra.mxu1 %v1477_v24 }
  0xaf   :  { %v210_v25 = vpop.f32.mrf.mxu0 }
  0xb0   :  { %v227_v30 = vadd.f32 %v223_v27, %v210_v25  ;;  %v1485_v25 = vld [vmem:[#allocation13] sm:$0xff] }
  0xb1   :  { %462 = vmatpush.bf16.msra.mxu2 %v1485_v25 }
  0xb7   :  { %v212_v29 = vpop.f32.mrf.mxu0 }
  0xb8   :  { %v228_v31 = vadd.f32 %v224_v28, %v212_v29 }
  0xba   :  { %v231_v32 = vpack.c.bf16 %v228_v31, %v227_v30 }
  0xbc   :  { %309 = vmatmul.bf16.vlgmr.msra.gmra.mxu1 %v231_v32 }
  0xbf   :  { %v215_v33 = vpop.f32.mrf.mxu0 }
  0xc0   :  { %v229_v37 = vadd.f32 %v225_v34, %v215_v33  ;;  %v320_v34 = vld [vmem:[#allocation10] sm:$0x1] }
  0xc7   :  { %v217_v36 = vpop.f32.mrf.mxu0 }
  0xc8   :  { %v230_v38 = vadd.f32 %v226_v35, %v217_v36 }
  0xca   :  { %v232_v39 = vpack.c.bf16 %v230_v38, %v229_v37  ;;  %v321_v38 = vld [vmem:[#allocation12] sm:$0x1] }
  0xcc   :  { %314 = vmatmul.bf16.gmra.mxu1 %v232_v39 }
 0x139   :  { %v310_v40 = vpop.f32.mrf.mxu1 }
 0x13a   :  { %v1910_v49 = vadd.f32 %v1549_v45, %v310_v40 }
 0x13c   :  { %v326_v56 = vmul.f32 %v1910_v49, %v1910_v49 }
 0x141   :  { %v312_v41 = vpop.f32.mrf.mxu1 }
 0x142   :  { %v1908_v47 = vadd.f32 %v1549_v45, %v312_v41 }
 0x144   :  { %v327_v51 = vmul.f32 %v1908_v47, %v1908_v47  ;;  %v330_v57 = vadd.f32 %v1908_v47, %v1910_v49 }
 0x146   :  { %v339_v60 = vadd.f32 %v327_v51, %v326_v56 }
 0x149   :  { %v315_v44 = vpop.f32.mrf.mxu1 }
 0x14a   :  { %v1912_v50 = vadd.f32 %v1549_v45, %v315_v44 }
 0x14c   :  { %v328_v58 = vmul.f32 %v1912_v50, %v1912_v50  ;;  %v331_v61 = vadd.f32 %v330_v57, %v1912_v50 }
 0x14e   :  { %v340_v0 = vadd.f32 %v339_v60, %v328_v58 }
 0x151   :  { %v317_v54 = vpop.f32.mrf.mxu1 }
 0x152   :  { %v318_v59 = vadd.f32 %v1549_v45, %v317_v54 }
 0x154   :  { %v325_v62 = vmul.f32 %v1916_v53, %v318_v59 }
 0x156   :  { %v329_v1 = vmul.f32 %v325_v62, %v318_v59  ;;  %v332_v2 = vadd.f32 %v331_v61, %v325_v62 }
 0x158   :  { %v333_v3 = vrot.slane %v332_v2, 4  ;;  %v341_v4 = vadd.f32 %v340_v0, %v329_v1 }
 0x15a   :  { %v334_v6 = vadd.f32 %v333_v3, %v332_v2  ;;  %v342_v7 = vrot.slane %v341_v4, 4 }
 0x15c   :  { %v335_v8 = vrot.slane %v334_v6, 2  ;;  %v343_v9 = vadd.f32 %v342_v7, %v341_v4 }
 0x15e   :  { %v336_v11 = vadd.f32 %v335_v8, %v334_v6  ;;  %v344_v12 = vrot.slane %v343_v9, 2 }
 0x160   :  { %v337_v14 = vrot.slane %v336_v11, 1  ;;  %v345_v15 = vadd.f32 %v344_v12, %v343_v9 }
 0x162   :  { %v338_v17 = vadd.f32 %v337_v14, %v336_v11  ;;  %v346_v18 = vrot.slane %v345_v15, 1 }
 0x164   :  { %v347_v19 = vadd.f32 %v346_v18, %v345_v15  ;;  %v348_v20 = vmul.f32 0.033333335, %v338_v17 }
 0x166   :  { %v349_v23 = vmul.f32 0.033333335, %v347_v19  ;;  %v350_v24 = vmul.f32 %v348_v20, %v348_v20 }
 0x168   :  { %v351_v26 = vsub.f32 %v349_v23, %v350_v24 }
 0x16a   :  { %v352_v27 = vmax.f32 %v351_v26, 0.0 }
 0x16c   :  { %v353_v28 = vadd.f32 1e-05, %v352_v27 }
 0x16e   :  { %1555 = vrsqrt.f32 %v353_v28  ;;  %vm360_vm3 = vweird.f32 %v353_v28 }
 0x174   :  { %v1556_v29 = vpop.eup %1555 }
 0x175   :  { %v355_v30 = vmul.f32 %v1556_v29, %v353_v28  ;;  %vm361_vm2 = vweird.f32 %v1556_v29 }
 0x176   :  { %vm362_vm4 = vmor %vm360_vm3, %vm361_vm2 }
 0x177   :  { %v356_v31 = vmul.f32 %v1556_v29, %v355_v30 }
 0x179   :  { %v357_v32 = vmul.f32 0.5, %v356_v31 }
 0x17b   :  { %v358_v33 = vsub.f32 1.5, %v357_v32 }
 0x17d   :  { %v359_v35 = vmul.f32 %v1556_v29, %v358_v33 }
 0x17f   :  { %v363_v36 = vsel %vm362_vm4, %v1556_v29, %v359_v35 }
 0x180   :  { %v364_v37 = vmul.f32 %v363_v36, %v320_v34 }
 0x182   :  { %v368_v39 = vperm.slane %v364_v37, 0  ;;  %v365_v40 = vmul.f32 %v364_v37, %v348_v20 }
 0x184   :  { %v366_v41 = vsub.f32 %v321_v38, %v365_v40  ;;  %v373_v42 = vmul.f32 %v368_v39, %v318_v59  ;;  %v370_v43 = vmul.f32 %v368_v39, %v1910_v49  ;;  %v371_v44 = vmul.f32 %v368_v39, %v1908_v47  ;;  %v1550_v47 = vld [vmem:[%s2061_s8] ss:$0 sm:$0xff] }
 0x185   :  { %v372_v46 = vmul.f32 %v368_v39, %v1912_v50  ;;  %v474_v39 = vld [vmem:[#allocation15] sm:$0x1] }
 0x186   :  { %v375_v45 = vperm.slane %v366_v41, 0 }
 0x188   :  { %v377_v48 = vadd.f32 %v375_v45, %v370_v43  ;;  %v378_v51 = vadd.f32 %v375_v45, %v371_v44  ;;  %v379_v52 = vadd.f32 %v375_v45, %v372_v46  ;;  %v380_v54 = vadd.f32 %v375_v45, %v373_v42  ;;  %v475_v43 = vld [vmem:[%s2063_s10] sm:$0x1] }
 0x18a   :  { %v381_v55 = vmax.f32 %v377_v48, 0.0  ;;  %v382_v56 = vmax.f32 %v378_v51, 0.0  ;;  %v383_v57 = vmax.f32 %v379_v52, 0.0  ;;  %v384_v58 = vmax.f32 %v380_v54, 0.0  ;;  %v1500_v51 = vld [vmem:[#allocation9 + $0x78] sm:$0xff] }
 0x18b   :  { %643 = vmatpush.bf16.msrb.mxu0 %v1500_v51 }
 0x18c   :  { %v385_v60 = vpack.c.bf16 %v382_v56, %v381_v55  ;;  %v386_v61 = vpack.c.bf16 %v384_v58, %v383_v57  ;;  %v1499_v57 = vld [vmem:[#allocation9 + $0x70] sm:$0xff] }
 0x18e   :  { %463 = vmatmul.bf16.vlgmr.msra.gmra.mxu2 %v385_v60 }
 0x18f   :  { %644 = vmatpush.bf16.msrb.mxu0 %v1499_v57 }
 0x19e   :  { %468 = vmatmul.bf16.gmra.mxu2 %v386_v61 }
 0x211   :  { %v464_v59 = vpop.f32.mrf.mxu2 }
 0x212   :  { %v465_v63 = vadd.f32 %v1550_v47, %v464_v59 }
 0x214   :  { %v480_v3 = vmul.f32 %v465_v63, %v465_v63 }
 0x219   :  { %v466_v62 = vpop.f32.mrf.mxu2 }
 0x21a   :  { %v467_v50 = vadd.f32 %v1550_v47, %v466_v62 }
 0x21c   :  { %v481_v1 = vmul.f32 %v467_v50, %v467_v50  ;;  %v484_v4 = vadd.f32 %v467_v50, %v465_v63 }
 0x21e   :  { %v493_v7 = vadd.f32 %v481_v1, %v480_v3  ;;  %v1496_v3 = vld [vmem:[#allocation9 + $0x58] sm:$0xff] }
 0x221   :  { %v469_v49 = vpop.f32.mrf.mxu2 }
 0x222   :  { %v470_v0 = vadd.f32 %v1550_v47, %v469_v49 }
 0x224   :  { %v482_v5 = vmul.f32 %v470_v0, %v470_v0  ;;  %v485_v8 = vadd.f32 %v484_v4, %v470_v0  ;;  %v1495_v4 = vld [vmem:[#allocation9 + $0x50] sm:$0xff] }
 0x226   :  { %v494_v10 = vadd.f32 %v493_v7, %v482_v5  ;;  %v1494_v5 = vld [vmem:[#allocation9 + $0x48] sm:$0xff] }
 0x229   :  { %v471_v2 = vpop.f32.mrf.mxu2 }
 0x22a   :  { %v472_v6 = vadd.f32 %v1550_v47, %v471_v2  ;;  %v1498_v47 = vld [vmem:[#allocation9 + $0x68] sm:$0xff] }
 0x22b   :  { %645 = vmatpush.bf16.msrb.mxu0 %v1498_v47 }
 0x22c   :  { %v479_v9 = vmul.f32 %v1916_v53, %v472_v6 }
 0x22e   :  { %v483_v11 = vmul.f32 %v479_v9, %v472_v6  ;;  %v486_v12 = vadd.f32 %v485_v8, %v479_v9  ;;  %v562_v8 = vstv %s561_s24 }
 0x230   :  { %v487_v14 = vrot.slane %v486_v12, 4  ;;  %v495_v15 = vadd.f32 %v494_v10, %v483_v11 }
 0x232   :  { %v488_v16 = vadd.f32 %v487_v14, %v486_v12  ;;  %v496_v17 = vrot.slane %v495_v15, 4 }
 0x234   :  { %v489_v18 = vrot.slane %v488_v16, 2  ;;  %v497_v19 = vadd.f32 %v496_v17, %v495_v15 }
 0x236   :  { %v490_v20 = vadd.f32 %v489_v18, %v488_v16  ;;  %v498_v22 = vrot.slane %v497_v19, 2 }
 0x238   :  { %v491_v23 = vrot.slane %v490_v20, 1  ;;  %v499_v24 = vadd.f32 %v498_v22, %v497_v19 }
 0x23a   :  { %v492_v25 = vadd.f32 %v491_v23, %v490_v20  ;;  %v500_v26 = vrot.slane %v499_v24, 1 }
 0x23c   :  { %v501_v27 = vadd.f32 %v500_v26, %v499_v24  ;;  %v502_v28 = vmul.f32 0.033333335, %v492_v25 }
 0x23e   :  { %v503_v29 = vmul.f32 0.033333335, %v501_v27  ;;  %v504_v30 = vmul.f32 %v502_v28, %v502_v28  ;;  %v1551_v27 = vld [vmem:[%s2057_s4 + $0x1] ss:$0 sm:$0xff] }
 0x240   :  { %v505_v31 = vsub.f32 %v503_v29, %v504_v30 }
 0x242   :  { %v506_v32 = vmax.f32 %v505_v31, 0.0  ;;  %v1508_v31 = vld [vmem:[#allocation13 + $0x78] sm:$0xff] }
 0x244   :  { %v507_v33 = vadd.f32 1e-05, %v506_v32 }
 0x246   :  { %1557 = vrsqrt.f32 %v507_v33  ;;  %vm514_vm6 = vweird.f32 %v507_v33 }
 0x24c   :  { %v1558_v34 = vpop.eup %1557 }
 0x24d   :  { %v509_v35 = vmul.f32 %v1558_v34, %v507_v33  ;;  %vm515_vm5 = vweird.f32 %v1558_v34 }
 0x24e   :  { %vm516_vm7 = vmor %vm514_vm6, %vm515_vm5 }
 0x24f   :  { %v510_v36 = vmul.f32 %v1558_v34, %v509_v35 }
 0x251   :  { %v511_v37 = vmul.f32 0.5, %v510_v36 }
 0x253   :  { %v512_v38 = vsub.f32 1.5, %v511_v37 }
 0x255   :  { %v513_v40 = vmul.f32 %v1558_v34, %v512_v38  ;;  %v1507_v38 = vld [vmem:[#allocation13 + $0x70] sm:$0xff] }
 0x257   :  { %v517_v41 = vsel %vm516_vm7, %v1558_v34, %v513_v40 }
 0x258   :  { %v518_v42 = vmul.f32 %v517_v41, %v474_v39 }
 0x25a   :  { %v522_v44 = vperm.slane %v518_v42, 0  ;;  %v519_v45 = vmul.f32 %v518_v42, %v502_v28 }
 0x25c   :  { %v520_v46 = vsub.f32 %v475_v43, %v519_v45  ;;  %v527_v48 = vmul.f32 %v522_v44, %v472_v6  ;;  %v526_v52 = vmul.f32 %v522_v44, %v470_v0  ;;  %v524_v55 = vmul.f32 %v522_v44, %v465_v63  ;;  %v1493_v6 = vld [vmem:[#allocation9 + $0x40] sm:$0xff]  ;;  %v1506_v45 = vld [vmem:[#allocation13 + $0x68] sm:$0xff] }
 0x25d   :  { %v525_v56 = vmul.f32 %v522_v44, %v467_v50  ;;  %v1497_v50 = vld [vmem:[#allocation9 + $0x60] sm:$0xff] }
 0x25e   :  { %v529_v54 = vperm.slane %v520_v46, 0  ;;  %646 = vmatpush.bf16.msrb.mxu0 %v1497_v50  ;;  %v1503_v50 = vld [vmem:[#allocation13 + $0x50] sm:$0xff] }
 0x260   :  { %v533_v58 = vadd.f32 %v529_v54, %v526_v52  ;;  %v534_v60 = vadd.f32 %v529_v54, %v527_v48  ;;  %v531_v61 = vadd.f32 %v529_v54, %v524_v55  ;;  %v532_v59 = vadd.f32 %v529_v54, %v525_v56  ;;  %v1505_v54 = vld [vmem:[#allocation13 + $0x60] sm:$0xff] }
 0x262   :  { %v1936_v62 = vmax.f32 %v533_v58, 0.0  ;;  %v1938_v49 = vmax.f32 %v534_v60, 0.0  ;;  %v1942_v2 = vmax.f32 %v531_v61, 0.0  ;;  %v1944_v0 = vmax.f32 %v532_v59, 0.0  ;;  %647 = vmatpush.bf16.msrb.mxu0 %v1496_v3  ;;  %v1504_v60 = vld [vmem:[#allocation13 + $0x58] sm:$0xff] }
 0x264   :  { %v540_v1 = vpack.c.bf16 %v1938_v49, %v1936_v62  ;;  %v539_v63 = vpack.c.bf16 %v1944_v0, %v1942_v2  ;;  %v563_v9 = vmul.f32 %v562_v8, %v1942_v2  ;;  %v564_v10 = vmul.f32 %v562_v8, %v1944_v0 }
 0x265   :  { %v565_v17 = vmul.f32 %v562_v8, %v1936_v62  ;;  %v566_v18 = vmul.f32 %v562_v8, %v1938_v49  ;;  %v1501_v8 = vld [vmem:[#allocation13 + $0x40] sm:$0xff] }
 0x266   :  { %547 = vmatpush.bf16.msra.mxu3 %v540_v1  ;;  %648 = vmatpush.bf16.msrb.mxu0 %v1495_v4  ;;  %v1502_v4 = vld [vmem:[#allocation13 + $0x48] sm:$0xff] }
 0x26a   :  { %548 = vmatpush.bf16.msra.mxu3 %v539_v63  ;;  %649 = vmatpush.bf16.msrb.mxu0 %v1494_v5 }
 0x26d   :  { %1337 = vmatmul.msk.bf16.vlgmr.msra.gmra.mxu3 %vm194_vm0, %v1897_v13 }
 0x26e   :  { %650 = vmatpush.bf16.msrb.mxu0 %v1493_v6  ;;  %801 = vmatpush.bf16.msrb.mxu3 %v1508_v31 }
 0x272   :  { %802 = vmatpush.bf16.msrb.mxu3 %v1507_v38 }
 0x276   :  { %803 = vmatpush.bf16.msrb.mxu3 %v1506_v45 }
 0x27a   :  { %804 = vmatpush.bf16.msrb.mxu3 %v1505_v54 }
 0x27d   :  { %1338 = vmatmul.msk.bf16.gmra.mxu3 %vm194_vm0, %v1901_v21 }
 0x27e   :  { %805 = vmatpush.bf16.msrb.mxu3 %v1504_v60 }
 0x282   :  { %806 = vmatpush.bf16.msrb.mxu3 %v1503_v50 }
 0x286   :  { %807 = vmatpush.bf16.msrb.mxu3 %v1502_v4 }
 0x28a   :  { %808 = vmatpush.bf16.msrb.mxu3 %v1501_v8 }
 0x2f0   :  { %v550_v7 = vpop.f32.mrf.mxu3 }
 0x2f1   :  { %v567_v12 = vadd.f32 %v563_v9, %v550_v7 }
 0x2f8   :  { %v552_v11 = vpop.f32.mrf.mxu3 }
 0x2f9   :  { %v568_v14 = vadd.f32 %v564_v10, %v552_v11 }
 0x2fb   :  { %v571_v15 = vpack.c.bf16 %v568_v14, %v567_v12 }
 0x2fd   :  { %651 = vmatmul.bf16.vlgmr.msrb.gmra.mxu0 %v571_v15 }
 0x300   :  { %v555_v16 = vpop.f32.mrf.mxu3 }
 0x301   :  { %v569_v20 = vadd.f32 %v565_v17, %v555_v16  ;;  %v663_v17 = vld [vmem:[#allocation10 + $0x1] sm:$0x1] }
 0x308   :  { %v557_v19 = vpop.f32.mrf.mxu3 }
 0x309   :  { %v570_v22 = vadd.f32 %v566_v18, %v557_v19 }
 0x30b   :  { %v572_v23 = vpack.c.bf16 %v570_v22, %v569_v20  ;;  %v665_v22 = vld [vmem:[#allocation12 + $0x1] sm:$0x1] }
 0x30d   :  { %656 = vmatmul.bf16.gmra.mxu0 %v572_v23 }
 0x37a   :  { %v652_v24 = vpop.f32.mrf.mxu0 }
 0x37b   :  { %v1961_v29 = vadd.f32 %v1551_v27, %v652_v24 }
 0x37d   :  { %v670_v34 = vmul.f32 %v1961_v29, %v1961_v29 }
 0x382   :  { %v654_v25 = vpop.f32.mrf.mxu0 }
 0x383   :  { %v1959_v28 = vadd.f32 %v1551_v27, %v654_v25 }
 0x385   :  { %v671_v32 = vmul.f32 %v1959_v28, %v1959_v28  ;;  %v674_v35 = vadd.f32 %v1959_v28, %v1961_v29 }
 0x387   :  { %v683_v39 = vadd.f32 %v671_v32, %v670_v34 }
 0x38a   :  { %v657_v26 = vpop.f32.mrf.mxu0 }
 0x38b   :  { %v1963_v30 = vadd.f32 %v1551_v27, %v657_v26 }
 0x38d   :  { %v672_v36 = vmul.f32 %v1963_v30, %v1963_v30  ;;  %v675_v40 = vadd.f32 %v674_v35, %v1963_v30 }
 0x38f   :  { %v684_v42 = vadd.f32 %v683_v39, %v672_v36 }
 0x392   :  { %v659_v33 = vpop.f32.mrf.mxu0 }
 0x393   :  { %v660_v37 = vadd.f32 %v1551_v27, %v659_v33 }
 0x395   :  { %v669_v41 = vmul.f32 %v1916_v53, %v660_v37 }
 0x397   :  { %v673_v43 = vmul.f32 %v669_v41, %v660_v37  ;;  %v676_v44 = vadd.f32 %v675_v40, %v669_v41 }
 0x399   :  { %v677_v46 = vrot.slane %v676_v44, 4  ;;  %v685_v48 = vadd.f32 %v684_v42, %v673_v43 }
 0x39b   :  { %v678_v51 = vadd.f32 %v677_v46, %v676_v44  ;;  %v686_v52 = vrot.slane %v685_v48, 4 }
 0x39d   :  { %v679_v55 = vrot.slane %v678_v51, 2  ;;  %v687_v56 = vadd.f32 %v686_v52, %v685_v48 }
 0x39f   :  { %v680_v57 = vadd.f32 %v679_v55, %v678_v51  ;;  %v688_v58 = vrot.slane %v687_v56, 2 }
 0x3a1   :  { %v681_v61 = vrot.slane %v680_v57, 1  ;;  %v689_v59 = vadd.f32 %v688_v58, %v687_v56 }
 0x3a3   :  { %v682_v47 = vadd.f32 %v681_v61, %v680_v57  ;;  %v690_v1 = vrot.slane %v689_v59, 1 }
 0x3a5   :  { %v691_v63 = vadd.f32 %v690_v1, %v689_v59  ;;  %v692_v3 = vmul.f32 0.033333335, %v682_v47 }
 0x3a7   :  { %v693_v5 = vmul.f32 0.033333335, %v691_v63  ;;  %v694_v6 = vmul.f32 %v692_v3, %v692_v3 }
 0x3a9   :  { %v695_v7 = vsub.f32 %v693_v5, %v694_v6 }
 0x3ab   :  { %v696_v9 = vmax.f32 %v695_v7, 0.0 }
 0x3ad   :  { %v697_v10 = vadd.f32 1e-05, %v696_v9 }
 0x3af   :  { %1559 = vrsqrt.f32 %v697_v10  ;;  %vm704_vm9 = vweird.f32 %v697_v10 }
 0x3b5   :  { %v1560_v11 = vpop.eup %1559 }
 0x3b6   :  { %v699_v12 = vmul.f32 %v1560_v11, %v697_v10  ;;  %vm705_vm8 = vweird.f32 %v1560_v11 }
 0x3b7   :  { %vm706_vm10 = vmor %vm704_vm9, %vm705_vm8 }
 0x3b8   :  { %v700_v14 = vmul.f32 %v1560_v11, %v699_v12 }
 0x3ba   :  { %v701_v15 = vmul.f32 0.5, %v700_v14 }
 0x3bc   :  { %v702_v16 = vsub.f32 1.5, %v701_v15 }
 0x3be   :  { %v703_v18 = vmul.f32 %v1560_v11, %v702_v16 }
 0x3c0   :  { %v707_v19 = vsel %vm706_vm10, %v1560_v11, %v703_v18 }
 0x3c1   :  { %v708_v20 = vmul.f32 %v707_v19, %v663_v17 }
 0x3c3   :  { %v709_v23 = vmul.f32 %v708_v20, %v692_v3  ;;  %v712_v24 = vperm.slane %v708_v20, 0 }
 0x3c5   :  { %v710_v25 = vsub.f32 %v665_v22, %v709_v23  ;;  %v717_v26 = vmul.f32 %v712_v24, %v660_v37  ;;  %v714_v27 = vmul.f32 %v712_v24, %v1961_v29  ;;  %v715_v31 = vmul.f32 %v712_v24, %v1959_v28  ;;  %v1552_v28 = vld [vmem:[%s2061_s8 + $0x1] ss:$0 sm:$0xff] }
 0x3c6   :  { %v716_v33 = vmul.f32 %v712_v24, %v1963_v30 }
 0x3c7   :  { %v719_v32 = vperm.slane %v710_v25, 0 }
 0x3c9   :  { %v721_v34 = vadd.f32 %v719_v32, %v714_v27  ;;  %v722_v35 = vadd.f32 %v719_v32, %v715_v31  ;;  %v723_v36 = vadd.f32 %v719_v32, %v716_v33  ;;  %v724_v38 = vadd.f32 %v719_v32, %v717_v26  ;;  %v821_v27 = vld [vmem:[#allocation15 + $0x1] sm:$0x1] }
 0x3cb   :  { %v725_v39 = vmax.f32 %v721_v34, 0.0  ;;  %v726_v40 = vmax.f32 %v722_v35, 0.0  ;;  %v727_v41 = vmax.f32 %v723_v36, 0.0  ;;  %v728_v42 = vmax.f32 %v724_v38, 0.0  ;;  %v1406_v34 = vld [vmem:[%s2063_s10 + $0x1] sm:$0x1] }
 0x3cd   :  { %v729_v43 = vpack.c.bf16 %v726_v40, %v725_v39  ;;  %v730_v44 = vpack.c.bf16 %v728_v42, %v727_v41  ;;  %v1516_v40 = vld [vmem:[#allocation9 + $0xb8] sm:$0xff] }
 0x3ce   :  { %995 = vmatpush.bf16.msrb.mxu2 %v1516_v40 }
 0x3cf   :  { %809 = vmatmul.bf16.vlgmr.msrb.gmra.mxu3 %v729_v43 }
 0x3df   :  { %814 = vmatmul.bf16.gmra.mxu3 %v730_v44 }
 0x452   :  { %v810_v37 = vpop.f32.mrf.mxu3 }
 0x453   :  { %v811_v46 = vadd.f32 %v1552_v28, %v810_v37  ;;  %v1515_v37 = vld [vmem:[#allocation9 + $0xb0] sm:$0xff] }
 0x454   :  { %996 = vmatpush.bf16.msrb.mxu2 %v1515_v37 }
 0x455   :  { %v828_v54 = vmul.f32 %v811_v46, %v811_v46 }
 0x45a   :  { %v812_v45 = vpop.f32.mrf.mxu3 }
 0x45b   :  { %v813_v30 = vadd.f32 %v1552_v28, %v812_v45 }
 0x45d   :  { %v829_v51 = vmul.f32 %v813_v30, %v813_v30  ;;  %v832_v55 = vadd.f32 %v813_v30, %v811_v46 }
 0x45f   :  { %v841_v58 = vadd.f32 %v829_v51, %v828_v54 }
 0x462   :  { %v815_v29 = vpop.f32.mrf.mxu3 }
 0x463   :  { %v816_v48 = vadd.f32 %v1552_v28, %v815_v29 }
 0x465   :  { %v830_v56 = vmul.f32 %v816_v48, %v816_v48  ;;  %v833_v60 = vadd.f32 %v832_v55, %v816_v48  ;;  %v1514_v55 = vld [vmem:[#allocation9 + $0xa8] sm:$0xff] }
 0x466   :  { %997 = vmatpush.bf16.msrb.mxu2 %v1514_v55 }
 0x467   :  { %v842_v59 = vadd.f32 %v841_v58, %v830_v56  ;;  %v1512_v58 = vld [vmem:[#allocation9 + $0x98] sm:$0xff] }
 0x46a   :  { %v817_v52 = vpop.f32.mrf.mxu3 }
 0x46b   :  { %v818_v57 = vadd.f32 %v1552_v28, %v817_v52 }
 0x46d   :  { %v827_v61 = vmul.f32 %v1916_v53, %v818_v57 }
 0x46f   :  { %v831_v47 = vmul.f32 %v827_v61, %v818_v57  ;;  %v834_v1 = vadd.f32 %v833_v60, %v827_v61  ;;  %v1511_v60 = vld [vmem:[#allocation9 + $0x90] sm:$0xff]  ;;  %v1510_v61 = vld [vmem:[#allocation9 + $0x88] sm:$0xff] }
 0x471   :  { %v835_v50 = vrot.slane %v834_v1, 4  ;;  %v843_v63 = vadd.f32 %v842_v59, %v831_v47  ;;  %v1509_v59 = vld [vmem:[#allocation9 + $0x80] sm:$0xff] }
 0x473   :  { %v836_v3 = vadd.f32 %v835_v50, %v834_v1  ;;  %v844_v4 = vrot.slane %v843_v63, 4  ;;  %v914_v1 = vstv %s913_s13 }
 0x475   :  { %v837_v5 = vrot.slane %v836_v3, 2  ;;  %v845_v6 = vadd.f32 %v844_v4, %v843_v63 }
 0x477   :  { %v838_v7 = vadd.f32 %v837_v5, %v836_v3  ;;  %v846_v8 = vrot.slane %v845_v6, 2 }
 0x479   :  { %v839_v9 = vrot.slane %v838_v7, 1  ;;  %v847_v10 = vadd.f32 %v846_v8, %v845_v6 }
 0x47b   :  { %v840_v11 = vadd.f32 %v839_v9, %v838_v7  ;;  %v848_v12 = vrot.slane %v847_v10, 1 }
 0x47d   :  { %v849_v14 = vadd.f32 %v848_v12, %v847_v10  ;;  %v850_v15 = vmul.f32 0.033333335, %v840_v11 }
 0x47f   :  { %v851_v16 = vmul.f32 0.033333335, %v849_v14  ;;  %v852_v17 = vmul.f32 %v850_v15, %v850_v15 }
 0x481   :  { %v853_v18 = vsub.f32 %v851_v16, %v852_v17  ;;  %v1553_v16 = vld [vmem:[%s2057_s4 + $0x2] ss:$0 sm:$0xff] }
 0x483   :  { %v854_v19 = vmax.f32 %v853_v18, 0.0 }
 0x485   :  { %v855_v20 = vadd.f32 1e-05, %v854_v19 }
 0x487   :  { %1561 = vrsqrt.f32 %v855_v20  ;;  %vm862_vm12 = vweird.f32 %v855_v20 }
 0x48d   :  { %v1562_v22 = vpop.eup %1561 }
 0x48e   :  { %v857_v23 = vmul.f32 %v1562_v22, %v855_v20  ;;  %vm863_vm11 = vweird.f32 %v1562_v22  ;;  %v1524_v20 = vld [vmem:[#allocation13 + $0xb8] sm:$0xff] }
 0x48f   :  { %vm864_vm13 = vmor %vm862_vm12, %vm863_vm11  ;;  %1153 = vmatpush.bf16.msra.mxu0 %v1524_v20  ;;  %1525 = vmatpush.bf16.msra.mxu3 %v1524_v20 }
 0x490   :  { %v858_v24 = vmul.f32 %v1562_v22, %v857_v23 }
 0x492   :  { %v859_v25 = vmul.f32 0.5, %v858_v24 }
 0x494   :  { %v860_v26 = vsub.f32 1.5, %v859_v25 }
 0x496   :  { %v861_v31 = vmul.f32 %v1562_v22, %v860_v26 }
 0x498   :  { %v865_v32 = vsel %vm864_vm13, %v1562_v22, %v861_v31  ;;  %v1523_v31 = vld [vmem:[#allocation13 + $0xb0] sm:$0xff] }
 0x499   :  { %v866_v33 = vmul.f32 %v865_v32, %v821_v27  ;;  %1154 = vmatpush.bf16.msra.mxu0 %v1523_v31  ;;  %1526 = vmatpush.bf16.msra.mxu3 %v1523_v31 }
 0x49b   :  { %v867_v35 = vmul.f32 %v866_v33, %v850_v15  ;;  %v870_v36 = vperm.slane %v866_v33, 0 }
 0x49d   :  { %v868_v38 = vsub.f32 %v1406_v34, %v867_v35  ;;  %v875_v39 = vmul.f32 %v870_v36, %v818_v57  ;;  %v874_v41 = vmul.f32 %v870_v36, %v816_v48  ;;  %v872_v43 = vmul.f32 %v870_v36, %v811_v46 }
 0x49e   :  { %v873_v44 = vmul.f32 %v870_v36, %v813_v30  ;;  %v1513_v30 = vld [vmem:[#allocation9 + $0xa0] sm:$0xff] }
 0x49f   :  { %v877_v42 = vperm.slane %v868_v38, 0  ;;  %998 = vmatpush.bf16.msrb.mxu2 %v1513_v30 }
 0x4a1   :  { %v881_v45 = vadd.f32 %v877_v42, %v874_v41  ;;  %v882_v29 = vadd.f32 %v877_v42, %v875_v39  ;;  %v879_v28 = vadd.f32 %v877_v42, %v872_v43  ;;  %v880_v51 = vadd.f32 %v877_v42, %v873_v44  ;;  %v1522_v39 = vld [vmem:[#allocation13 + $0xa8] sm:$0xff]  ;;  %v1521_v44 = vld [vmem:[#allocation13 + $0xa0] sm:$0xff] }
 0x4a2   :  { %1155 = vmatpush.bf16.msra.mxu0 %v1522_v39  ;;  %1527 = vmatpush.bf16.msra.mxu3 %v1522_v39 }
 0x4a3   :  { %v1985_v52 = vmax.f32 %v881_v45, 0.0  ;;  %v1987_v54 = vmax.f32 %v882_v29, 0.0  ;;  %v1991_v57 = vmax.f32 %v879_v28, 0.0  ;;  %v1993_v48 = vmax.f32 %v880_v51, 0.0  ;;  %999 = vmatpush.bf16.msrb.mxu2 %v1512_v58  ;;  %v1520_v51 = vld [vmem:[#allocation13 + $0x98] sm:$0xff]  ;;  %v1519_v58 = vld [vmem:[#allocation13 + $0x90] sm:$0xff] }
 0x4a5   :  { %v892_v56 = vpack.c.bf16 %v1987_v54, %v1985_v52  ;;  %v891_v46 = vpack.c.bf16 %v1993_v48, %v1991_v57  ;;  %v915_v50 = vmul.f32 %v914_v1, %v1991_v57  ;;  %v916_v63 = vmul.f32 %v914_v1, %v1993_v48 }
 0x4a6   :  { %v917_v6 = vmul.f32 %v914_v1, %v1985_v52  ;;  %v918_v7 = vmul.f32 %v914_v1, %v1987_v54  ;;  %1156 = vmatpush.bf16.msra.mxu0 %v1521_v44  ;;  %1528 = vmatpush.bf16.msra.mxu3 %v1521_v44  ;;  %v1518_v1 = vld [vmem:[#allocation13 + $0x88] sm:$0xff] }
 0x4a7   :  { %899 = vmatpush.bf16.msrb.mxu1 %v892_v56  ;;  %1000 = vmatpush.bf16.msrb.mxu2 %v1511_v60 }
 0x4aa   :  { %1157 = vmatpush.bf16.msra.mxu0 %v1520_v51  ;;  %1529 = vmatpush.bf16.msra.mxu3 %v1520_v51 }
 0x4ab   :  { %900 = vmatpush.bf16.msrb.mxu1 %v891_v46  ;;  %1001 = vmatpush.bf16.msrb.mxu2 %v1510_v61 }
 0x4ae   :  { %1407 = vmatmul.msk.bf16.vlgmr.msrb.gmra.mxu1 %vm194_vm0, %v1897_v13  ;;  %1158 = vmatpush.bf16.msra.mxu0 %v1519_v58 }
 0x4af   :  { %1002 = vmatpush.bf16.msrb.mxu2 %v1509_v59  ;;  %1530 = vmatpush.bf16.msra.mxu3 %v1519_v58 }
 0x4b2   :  { %1159 = vmatpush.bf16.msra.mxu0 %v1518_v1 }
 0x4b3   :  { %1531 = vmatpush.bf16.msra.mxu3 %v1518_v1 }
 0x4be   :  { %1408 = vmatmul.msk.bf16.gmra.mxu1 %vm194_vm0, %v1901_v21 }
 0x52b   :  { %v902_v47 = vpop.f32.mrf.mxu1 }
 0x52c   :  { %v919_v13 = vadd.f32 %v915_v50, %v902_v47 }
 0x533   :  { %v904_v3 = vpop.f32.mrf.mxu1 }
 0x534   :  { %v920_v4 = vadd.f32 %v916_v63, %v904_v3  ;;  %v1517_v3 = vld [vmem:[#allocation13 + $0x80] sm:$0xff] }
 0x535   :  { %1160 = vmatpush.bf16.msra.mxu0 %v1517_v3  ;;  %1532 = vmatpush.bf16.msra.mxu3 %v1517_v3 }
 0x536   :  { %v923_v5 = vpack.c.bf16 %v920_v4, %v919_v13 }
 0x538   :  { %1003 = vmatmul.bf16.vlgmr.msrb.gmra.mxu2 %v923_v5 }
 0x53b   :  { %v907_v21 = vpop.f32.mrf.mxu1 }
 0x53c   :  { %v921_v9 = vadd.f32 %v917_v6, %v907_v21 }
 0x543   :  { %v909_v8 = vpop.f32.mrf.mxu1 }
 0x544   :  { %v922_v10 = vadd.f32 %v918_v7, %v909_v8  ;;  %v1015_v8 = vld [vmem:[#allocation10 + $0x2] sm:$0x1] }
 0x546   :  { %v924_v11 = vpack.c.bf16 %v922_v10, %v921_v9 }
 0x548   :  { %1008 = vmatmul.bf16.gmra.mxu2 %v924_v11 }
 0x5bb   :  { %v1004_v12 = vpop.f32.mrf.mxu2 }
 0x5bc   :  { %v2010_v18 = vadd.f32 %v1553_v16, %v1004_v12  ;;  %v1017_v12 = vld [vmem:[#allocation12 + $0x2] sm:$0x1] }
 0x5be   :  { %v1022_v24 = vmul.f32 %v2010_v18, %v2010_v18 }
 0x5c3   :  { %v1006_v14 = vpop.f32.mrf.mxu2 }
 0x5c4   :  { %v2008_v17 = vadd.f32 %v1553_v16, %v1006_v14 }
 0x5c6   :  { %v1023_v22 = vmul.f32 %v2008_v17, %v2008_v17  ;;  %v1026_v25 = vadd.f32 %v2008_v17, %v2010_v18 }
 0x5c8   :  { %v1035_v32 = vadd.f32 %v1023_v22, %v1022_v24 }
 0x5cb   :  { %v1009_v15 = vpop.f32.mrf.mxu2 }
 0x5cc   :  { %v2012_v19 = vadd.f32 %v1553_v16, %v1009_v15 }
 0x5ce   :  { %v1024_v26 = vmul.f32 %v2012_v19, %v2012_v19  ;;  %v1027_v33 = vadd.f32 %v1026_v25, %v2012_v19 }
 0x5d0   :  { %v1036_v35 = vadd.f32 %v1035_v32, %v1024_v26 }
 0x5d3   :  { %v1011_v23 = vpop.f32.mrf.mxu2 }
 0x5d4   :  { %v2022_v27 = vadd.f32 %v1553_v16, %v1011_v23 }
 0x5d6   :  { %v1021_v34 = vmul.f32 %v1916_v53, %v2022_v27 }
 0x5d8   :  { %v1025_v36 = vmul.f32 %v1021_v34, %v2022_v27  ;;  %v1028_v38 = vadd.f32 %v1027_v33, %v1021_v34 }
 0x5da   :  { %v1029_v40 = vrot.slane %v1028_v38, 4  ;;  %v1037_v41 = vadd.f32 %v1036_v35, %v1025_v36 }
 0x5dc   :  { %v1030_v42 = vadd.f32 %v1029_v40, %v1028_v38  ;;  %v1038_v43 = vrot.slane %v1037_v41, 4 }
 0x5de   :  { %v1031_v37 = vrot.slane %v1030_v42, 2  ;;  %v1039_v45 = vadd.f32 %v1038_v43, %v1037_v41 }
 0x5e0   :  { %v1032_v29 = vadd.f32 %v1031_v37, %v1030_v42  ;;  %v1040_v28 = vrot.slane %v1039_v45, 2 }
 0x5e2   :  { %v1033_v55 = vrot.slane %v1032_v29, 1  ;;  %v1041_v56 = vadd.f32 %v1040_v28, %v1039_v45 }
 0x5e4   :  { %v1034_v30 = vadd.f32 %v1033_v55, %v1032_v29  ;;  %v1042_v46 = vrot.slane %v1041_v56, 1 }
 0x5e6   :  { %v1043_v60 = vadd.f32 %v1042_v46, %v1041_v56  ;;  %v1044_v61 = vmul.f32 0.033333335, %v1034_v30 }
 0x5e8   :  { %v1045_v59 = vmul.f32 0.033333335, %v1043_v60  ;;  %v1046_v47 = vmul.f32 %v1044_v61, %v1044_v61 }
 0x5ea   :  { %v1047_v50 = vsub.f32 %v1045_v59, %v1046_v47 }
 0x5ec   :  { %v1048_v63 = vmax.f32 %v1047_v50, 0.0 }
 0x5ee   :  { %v1049_v13 = vadd.f32 1e-05, %v1048_v63 }
 0x5f0   :  { %1563 = vrsqrt.f32 %v1049_v13  ;;  %vm1056_vm15 = vweird.f32 %v1049_v13 }
 0x5f6   :  { %v1564_v4 = vpop.eup %1563 }
 0x5f7   :  { %v1051_v5 = vmul.f32 %v1564_v4, %v1049_v13  ;;  %vm1057_vm14 = vweird.f32 %v1564_v4 }
 0x5f8   :  { %vm1058_vm0 = vmor %vm1056_vm15, %vm1057_vm14 }
 0x5f9   :  { %v1052_v21 = vmul.f32 %v1564_v4, %v1051_v5 }
 0x5fb   :  { %v1053_v6 = vmul.f32 0.5, %v1052_v21 }
 0x5fd   :  { %v1054_v7 = vsub.f32 1.5, %v1053_v6 }
 0x5ff   :  { %v1055_v9 = vmul.f32 %v1564_v4, %v1054_v7 }
 0x601   :  { %v1059_v10 = vsel %vm1058_vm0, %v1564_v4, %v1055_v9 }
 0x602   :  { %v1060_v11 = vmul.f32 %v1059_v10, %v1015_v8 }
 0x604   :  { %v1061_v14 = vmul.f32 %v1060_v11, %v1044_v61  ;;  %v1064_v15 = vperm.slane %v1060_v11, 0 }
 0x606   :  { %v1062_v16 = vsub.f32 %v1017_v12, %v1061_v14  ;;  %v1069_v20 = vmul.f32 %v1064_v15, %v2022_v27  ;;  %v1066_v23 = vmul.f32 %v1064_v15, %v2010_v18  ;;  %v1067_v24 = vmul.f32 %v1064_v15, %v2008_v17  ;;  %v1554_v18 = vld [vmem:[%s2061_s8 + $0x2] ss:$0 sm:$0xff] }
 0x607   :  { %v1068_v25 = vmul.f32 %v1064_v15, %v2012_v19 }
 0x608   :  { %v1071_v22 = vperm.slane %v1062_v16, 0 }
 0x60a   :  { %v1076_v26 = vadd.f32 %v1071_v22, %v1069_v20  ;;  %v1073_v31 = vadd.f32 %v1071_v22, %v1066_v23  ;;  %v1074_v32 = vadd.f32 %v1071_v22, %v1067_v24  ;;  %v1075_v33 = vadd.f32 %v1071_v22, %v1068_v25  ;;  %v1173_v23 = vld [vmem:[#allocation15 + $0x2] sm:$0x1] }
 0x60c   :  { %v1080_v34 = vmax.f32 %v1076_v26, 0.0  ;;  %v1077_v35 = vmax.f32 %v1073_v31, 0.0  ;;  %v1078_v36 = vmax.f32 %v1074_v32, 0.0  ;;  %v1079_v38 = vmax.f32 %v1075_v33, 0.0  ;;  %v1476_v31 = vld [vmem:[%s2063_s10 + $0x2] sm:$0x1] }
 0x60d   :  { %s1800_s10 = smov [#allocation16]  }
 0x60e   :  { %v1081_v39 = vpack.c.bf16 %v1078_v36, %v1077_v35  ;;  %v1082_v40 = vpack.c.bf16 %v1080_v34, %v1079_v38  ;;  %s1251_s18 = sshll.u32 %s1800_s10, 4  ;;  %s1252_s18 = int_to_ptr.vmem [resolvable:$true] %s1251_s18 }
 0x610   :  { %1161 = vmatmul.bf16.vlgmr.msra.gmra.mxu0 %v1081_v39  ;;  %1166 = vmatmul.bf16.vlgmr.msra.gmra.mxu3 %v1082_v40 }
 0x68d   :  { %v1162_v27 = vpop.f32.mrf.mxu0 }
 0x68e   :  { %v1163_v19 = vadd.f32 %v1554_v18, %v1162_v27 }
 0x690   :  { %v1180_v44 = vmul.f32 %v1163_v19, %v1163_v19 }
 0x693   :  { %v1167_v17 = vpop.f32.mrf.mxu3 }
 0x694   :  { %v1168_v37 = vadd.f32 %v1554_v18, %v1167_v17 }
 0x695   :  { %v1164_v41 = vpop.f32.mrf.mxu0 }
 0x696   :  { %v1165_v42 = vadd.f32 %v1554_v18, %v1164_v41  ;;  %v1182_v55 = vmul.f32 %v1168_v37, %v1168_v37 }
 0x698   :  { %v1181_v43 = vmul.f32 %v1165_v42, %v1165_v42  ;;  %v1184_v45 = vadd.f32 %v1165_v42, %v1163_v19 }
 0x69a   :  { %v1193_v28 = vadd.f32 %v1181_v43, %v1180_v44  ;;  %v1185_v56 = vadd.f32 %v1184_v45, %v1168_v37  ;;  %v889_v43 = vmax.f32 %v1936_v62, %v1985_v52  ;;  %v887_v44 = vmax.f32 %v1942_v2, %v1991_v57 }
 0x69b   :  { %v1169_v29 = vpop.f32.mrf.mxu3  ;;  %v888_v45 = vmax.f32 %v1944_v0, %v1993_v48 }
 0x69c   :  { %v1170_v51 = vadd.f32 %v1554_v18, %v1169_v29  ;;  %v1194_v60 = vadd.f32 %v1193_v28, %v1182_v55 }
 0x69e   :  { %v1179_v30 = vmul.f32 %v1916_v53, %v1170_v51 }
 0x6a0   :  { %v1183_v46 = vmul.f32 %v1179_v30, %v1170_v51  ;;  %v1186_v58 = vadd.f32 %v1185_v56, %v1179_v30 }
 0x6a2   :  { %v1187_v61 = vrot.slane %v1186_v58, 4  ;;  %v1195_v59 = vadd.f32 %v1194_v60, %v1183_v46 }
 0x6a4   :  { %v1188_v47 = vadd.f32 %v1187_v61, %v1186_v58  ;;  %v1196_v1 = vrot.slane %v1195_v59, 4 }
 0x6a6   :  { %v1189_v50 = vrot.slane %v1188_v47, 2  ;;  %v1197_v63 = vadd.f32 %v1196_v1, %v1195_v59 }
 0x6a8   :  { %v1190_v3 = vadd.f32 %v1189_v50, %v1188_v47  ;;  %v1198_v13 = vrot.slane %v1197_v63, 2 }
 0x6aa   :  { %v1191_v4 = vrot.slane %v1190_v3, 1  ;;  %v1199_v5 = vadd.f32 %v1198_v13, %v1197_v63 }
 0x6ac   :  { %v1192_v21 = vadd.f32 %v1191_v4, %v1190_v3  ;;  %v1200_v6 = vrot.slane %v1199_v5, 1 }
 0x6ae   :  { %v1201_v7 = vadd.f32 %v1200_v6, %v1199_v5  ;;  %v1202_v8 = vmul.f32 0.033333335, %v1192_v21 }
 0x6b0   :  { %v1203_v9 = vmul.f32 0.033333335, %v1201_v7  ;;  %v1204_v10 = vmul.f32 %v1202_v8, %v1202_v8 }
 0x6b2   :  { %v1205_v53 = vsub.f32 %v1203_v9, %v1204_v10 }
 0x6b4   :  { %v1206_v11 = vmax.f32 %v1205_v53, 0.0 }
 0x6b6   :  { %v1207_v12 = vadd.f32 1e-05, %v1206_v11 }
 0x6b8   :  { %1565 = vrsqrt.f32 %v1207_v12  ;;  %vm1214_vm2 = vweird.f32 %v1207_v12 }
 0x6be   :  { %v1566_v14 = vpop.eup %1565 }
 0x6bf   :  { %v1209_v15 = vmul.f32 %v1566_v14, %v1207_v12  ;;  %vm1215_vm1 = vweird.f32 %v1566_v14 }
 0x6c0   :  { %vm1216_vm3 = vmor %vm1214_vm2, %vm1215_vm1 }
 0x6c1   :  { %v1210_v16 = vmul.f32 %v1566_v14, %v1209_v15 }
 0x6c3   :  { %v1211_v20 = vmul.f32 0.5, %v1210_v16 }
 0x6c5   :  { %v1212_v22 = vsub.f32 1.5, %v1211_v20 }
 0x6c7   :  { %v1213_v24 = vmul.f32 %v1566_v14, %v1212_v22 }
 0x6c9   :  { %v1217_v25 = vsel %vm1216_vm3, %v1566_v14, %v1213_v24 }
 0x6ca   :  { %v1218_v26 = vmul.f32 %v1217_v25, %v1173_v23 }
 0x6cc   :  { %v1219_v32 = vmul.f32 %v1218_v26, %v1202_v8  ;;  %v1222_v33 = vperm.slane %v1218_v26, 0 }
 0x6ce   :  { %v1220_v34 = vsub.f32 %v1476_v31, %v1219_v32  ;;  %v1227_v35 = vmul.f32 %v1222_v33, %v1170_v51  ;;  %v1224_v38 = vmul.f32 %v1222_v33, %v1163_v19  ;;  %v1225_v39 = vmul.f32 %v1222_v33, %v1165_v42 }
 0x6cf   :  { %v1226_v40 = vmul.f32 %v1222_v33, %v1168_v37  ;;  %v890_v19 = vmax.f32 %v1938_v49, %v1987_v54 }
 0x6d0   :  { %v1229_v36 = vperm.slane %v1220_v34, 0 }
 0x6d2   :  { %v1234_v27 = vadd.f32 %v1229_v36, %v1227_v35  ;;  %v1231_v18 = vadd.f32 %v1229_v36, %v1224_v38  ;;  %v1232_v17 = vadd.f32 %v1229_v36, %v1225_v39  ;;  %v1233_v41 = vadd.f32 %v1229_v36, %v1226_v40 }
 0x6d4   :  { %v1238_v29 = vmax.f32 %v1234_v27, 0.0  ;;  %v1235_v28 = vmax.f32 %v1231_v18, 0.0  ;;  %v1236_v51 = vmax.f32 %v1232_v17, 0.0  ;;  %v1237_v55 = vmax.f32 %v1233_v41, 0.0 }
 0x6d6   :  { %v1239_v42 = vmax.f32 %v887_v44, %v1235_v28  ;;  %v1240_v37 = vmax.f32 %v888_v45, %v1236_v51  ;;  %v1241_v56 = vmax.f32 %v889_v43, %v1237_v55  ;;  %v1242_v62 = vmax.f32 %v890_v19, %v1238_v29 }
 0x6d8   :  { %1243 = vst [vmem:[#allocation16] sm:$0xff] %v1239_v42 }
 0x6d9   :  { %1244 = vst [vmem:[#allocation16 + $0x8] sm:$0xff] %v1240_v37 }
 0x6da   :  { %1245 = vst [vmem:[#allocation16 + $0x10] sm:$0xff] %v1241_v56 }
 0x6db   :  { %1246 = vst [vmem:[#allocation16 + $0x18] sm:$0xff] %v1242_v62 }
 0x6dc   :  { %1259 = dma.vmem_to_hbm [thread:$0]  %s1252_s18, 512, %s1254_s6, [#allocation4], %s1793_s20, %s1793_s20, %s1794_s21  }
 0x6dd   :  { %1783 = dma.done.wait [#allocation4], 512  }
 0x6de   :  { %1784 = vsyncadd [#allocation4], 4294966784 }
 0x6df   :  { %1264 = vsyncpa [#allocation3], 1 }
 0x6e0   :  { %1265 = vsyncpa [#allocation7], 1 }
 0x6e1   :  { %1266 = vsyncpa [#allocation11], 1 }
 0x6e2   :  { %1267 = vsyncpa [#allocation14], 1 }
 0x6e3   :  { %1268 = vsyncpa [#allocation4], 1 }
 0x6e4   :  { %1269 = vsyncpa [#allocation5], 1 }

</bundles_post_ra>
